<compile_context>
chip_gen: v7x
topology: tpu7x:2x2x1
jax: 0.10.0
libtpu: 0.0.40
codegen_flags: <defaults>
</compile_context>

<pallas_src>
import jax
import jax.numpy as jnp
from jax.experimental import pallas as pl
from jax.experimental.pallas import tpu as pltpu


def _round_up(v, m):
    return (v + m - 1) // m * m


def lstm_fused_kernel(x_ref, w_ih_ref, w_hh_ref, b_ref, w_fc_ref, b_fc_ref,
                      out_ref, gx_sc, hs_sc, h_sc, c_sc):
    Bpc, H = h_sc.shape          # batch rows per chunk, true hidden size
    RC = gx_sc.shape[0]          # rows per (time-chunk x batch-chunk) block
    Tc = RC // Bpc               # timesteps per chunk

    # New batch chunk starts at time-chunk 0: reset the recurrent state.
    # (h/c scratch persists across the "arbitrary" time axis.)
    @pl.when(pl.program_id(1) == 0)
    def _():
        h_sc[...] = jnp.zeros_like(h_sc)
        c_sc[...] = jnp.zeros_like(c_sc)

    # ---- Phase 1: input projection for the whole chunk, bias folded in once.
    # bf16 MXU operands, f32 accumulation + f32 bias add.
    gx_sc[...] = (jnp.dot(x_ref[...], w_ih_ref[...],
                          preferred_element_type=jnp.float32)
                  + b_ref[...])                                   # (RC, Gp) f32

    # ---- Phase 2: sequential recurrence over this chunk's timesteps.
    # TODO(synk): weight-stationary MXU (matmul_push_rhs once, acc_lhs/pop per
    # step) would remove the per-step RHS push from the serial chain.
    def step(t, carry):
        r0 = pl.multiple_of(t * Bpc, Bpc)            # sublane-aligned row base
        gates = gx_sc[pl.ds(r0, Bpc), :] + jnp.dot(
            h_sc[...].astype(jnp.bfloat16), w_hh_ref[...],
            preferred_element_type=jnp.float32)       # (Bpc, Gp) f32

        # PyTorch gate order [i, f, g, o], packed compactly in lanes [0, 4H).
        # Pad lanes [4H, Gp) (if any) come from zero weight/bias columns and
        # are never read.
        i = jax.nn.sigmoid(gates[:, 0 * H:1 * H])
        f = jax.nn.sigmoid(gates[:, 1 * H:2 * H])
        g = jnp.tanh(gates[:, 2 * H:3 * H])
        o = jax.nn.sigmoid(gates[:, 3 * H:4 * H])

        c = f * c_sc[...] + i * g                    # f32 state math
        h = o * jnp.tanh(c)
        c_sc[...] = c
        h_sc[...] = h
        hs_sc[pl.ds(r0, Bpc), :] = h                 # buffer h_t for the FC
        return carry

    jax.lax.fori_loop(0, Tc, step, 0, unroll=min(Tc, 8))

    # ---- Phase 3: deferred FC over the whole chunk + one lane-dense store.
    out_ref[...] = (jnp.dot(hs_sc[...].astype(jnp.bfloat16), w_fc_ref[...],
                            preferred_element_type=jnp.float32)
                    + b_fc_ref[...]).astype(out_ref.dtype)


def timeseries_lstm_forward(x, params, *, batch_chunks=None, time_chunk=None):
    """x: (B, T, D_in) batch_first, float32. Returns (B, T, output_size)."""
    B, T, D_in = x.shape
    w_ih, w_hh, b_ih, b_hh, w_fc, b_fc = params       # PyTorch-shaped params
    H = w_hh.shape[1]                                 # w_hh: (4H, H)
    O = w_fc.shape[0]                                 # w_fc: (O, H)
    G = 4 * H

    LANE = 128
    SUBROW = 16                                       # keeps bf16 (16,128) tiles aligned
    Gp = _round_up(G, LANE)                           # packed-gate lane padding
    Op = _round_up(O, LANE)                           # lane-dense output padding

    # Batch chunking: a "parallel" grid axis so v7x's 2 TensorCores split the
    # batch; each chunk runs the full recurrence independently.
    if batch_chunks is None:
        batch_chunks = 2 if B > SUBROW else 1
    nb = max(1, int(batch_chunks))
    Bpc = _round_up(max(1, -(-B // nb)), SUBROW)      # rows per batch chunk
    Bp = nb * Bpc

    # Time chunking: cap per-chunk gx scratch (~8 MiB) so VMEM fits every
    # generation (v7x: 64 MiB physical) and DMA pipelining has >1 grid step.
    if time_chunk is None:
        gx_budget = 8 * 2**20
        time_chunk = max(1, min(T, 128, gx_budget // (Bpc * Gp * 4)))
    Tc = max(1, min(int(time_chunk), T))
    T_pad = _round_up(T, Tc)
    nt = T_pad // Tc
    RC = Tc * Bpc                                     # rows per kernel block

    # ---- Host-side layout prep (pad batch/time; time-major within a chunk).
    x_p = jnp.pad(x, ((0, Bp - B), (0, T_pad - T), (0, 0)))       # (Bp, T_pad, D)
    x_tm = (x_p.reshape(nb, Bpc, T_pad, D_in)
                .transpose(0, 2, 1, 3)
                .reshape(nb, T_pad * Bpc, D_in)
                .astype(jnp.bfloat16))                            # bf16 MXU operand

    # Compact gate layout: columns [0, 4H) are [i|f|g|o]; pad columns (if any)
    # are zero in both weights and bias so they never perturb real lanes.
    w_ih_t = jnp.pad(jnp.transpose(w_ih), ((0, 0), (0, Gp - G))).astype(jnp.bfloat16)
    w_hh_t = jnp.pad(jnp.transpose(w_hh), ((0, 0), (0, Gp - G))).astype(jnp.bfloat16)
    b_gate = jnp.pad((b_ih + b_hh).reshape(1, G),
                     ((0, 0), (0, Gp - G))).astype(jnp.float32)
    w_fc_t = jnp.pad(jnp.transpose(w_fc), ((0, 0), (0, Op - O))).astype(jnp.bfloat16)
    b_fc_p = jnp.pad(b_fc.reshape(1, O), ((0, 0), (0, Op - O))).astype(jnp.float32)

    # Explicit VMEM budget: double-buffered I/O blocks + weights + scratch, x2 headroom.
    f32b, bf16b = 4, 2
    vmem_need = (2 * RC * D_in * bf16b                       # x block
                 + 2 * RC * Op * f32b                        # out block
                 + 2 * (D_in * Gp + H * Gp + H * Op) * bf16b # weights
                 + 2 * (Gp + Op) * f32b                      # biases
                 + RC * Gp * f32b + RC * H * f32b            # gx + hs scratch
                 + 2 * Bpc * H * f32b)                       # h + c scratch
    vmem_limit = int(min(64 * 2**20, max(32 * 2**20, 2 * vmem_need)))

    out_3d = pl.pallas_call(
        lstm_fused_kernel,
        out_shape=jax.ShapeDtypeStruct((nb, T_pad * Bpc, Op), jnp.float32),
        grid=(nb, nt),
        in_specs=[
            pl.BlockSpec((None, RC, D_in), lambda b, t: (b, t, 0)),  # x chunk
            pl.BlockSpec((D_in, Gp), lambda b, t: (0, 0)),           # W_ih^T (bf16)
            pl.BlockSpec((H, Gp), lambda b, t: (0, 0)),              # W_hh^T (bf16)
            pl.BlockSpec((1, Gp), lambda b, t: (0, 0)),              # b_ih + b_hh (f32)
            pl.BlockSpec((H, Op), lambda b, t: (0, 0)),              # W_fc^T (bf16)
            pl.BlockSpec((1, Op), lambda b, t: (0, 0)),              # b_fc (f32)
        ],
        out_specs=pl.BlockSpec((None, RC, Op), lambda b, t: (b, t, 0)),
        scratch_shapes=[
            pltpu.VMEM((RC, Gp), jnp.float32),   # gx: chunk input projections
            pltpu.VMEM((RC, H), jnp.float32),    # hs: chunk hidden states
            pltpu.VMEM((Bpc, H), jnp.float32),   # h state (persists across t-chunks)
            pltpu.VMEM((Bpc, H), jnp.float32),   # c state (persists across t-chunks)
        ],
        compiler_params=pltpu.CompilerParams(
            dimension_semantics=("parallel", "arbitrary"),
            vmem_limit_bytes=vmem_limit),
    )(x_tm, w_ih_t, w_hh_t, b_gate, w_fc_t, b_fc_p)

    # Undo the chunked, time-major layout; drop batch/time/output padding.
    out = (out_3d.reshape(nb, T_pad, Bpc, Op)
                 .transpose(0, 2, 1, 3)
                 .reshape(Bp, T_pad, Op)[:B, :T, :O])
    return out


def reference_forward(x, params):
    """Pure-JAX f32 reference matching nn.LSTM(batch_first=True) + nn.Linear."""
    w_ih, w_hh, b_ih, b_hh, w_fc, b_fc = params
    H = w_hh.shape[1]
    B = x.shape[0]

    def step(carry, x_t):
        h, c = carry
        gates = x_t @ w_ih.T + b_ih + h @ w_hh.T + b_hh
        i = jax.nn.sigmoid(gates[:, 0 * H:1 * H])
        f = jax.nn.sigmoid(gates[:, 1 * H:2 * H])
        g = jnp.tanh(gates[:, 2 * H:3 * H])
        o = jax.nn.sigmoid(gates[:, 3 * H:4 * H])
        c = f * c + i * g
        h = o * jnp.tanh(c)
        return (h, c), h

    x_tm = jnp.transpose(x, (1, 0, 2))
    h0 = jnp.zeros((B, H), jnp.float32)
    (_, _), hs = jax.lax.scan(step, (h0, h0), x_tm)   # hs: (T, B, H)
    out = hs @ w_fc.T + b_fc
    return jnp.transpose(out, (1, 0, 2))


def init_params(key, input_size, hidden_size, output_size):
    """Deterministic init mimicking PyTorch's U(-1/sqrt(H), 1/sqrt(H))."""
    k = 1.0 / jnp.sqrt(jnp.float32(hidden_size))
    ks = jax.random.split(key, 6)
    u = lambda kk, shape: jax.random.uniform(kk, shape, jnp.float32, -k, k)
    w_ih = u(ks[0], (4 * hidden_size, input_size))
    w_hh = u(ks[1], (4 * hidden_size, hidden_size))
    b_ih = u(ks[2], (4 * hidden_size,))
    b_hh = u(ks[3], (4 * hidden_size,))
    w_fc = u(ks[4], (output_size, hidden_size))
    b_fc = u(ks[5], (output_size,))
    return (w_ih, w_hh, b_ih, b_hh, w_fc, b_fc)


if __name__ == "__main__":
    B, T, D_in, H, O = 2, 8, 4, 32, 8

    key = jax.random.PRNGKey(0)
    kx, kp = jax.random.split(key)
    x = jax.random.normal(kx, (B, T, D_in), jnp.float32)
    params = init_params(kp, D_in, H, O)

    out = timeseries_lstm_forward(x, params)
    out = jax.block_until_ready(out)

    ref = jax.block_until_ready(reference_forward(x, params))
    assert out.shape == (B, T, O)
    # bf16 MXU operands (f32 accumulation + f32 gate/state math): tolerance-
    # level parity only, not bit-exact.
    assert jnp.allclose(out, ref, atol=3e-2, rtol=3e-2), (
        f"max abs err {jnp.max(jnp.abs(out - ref))}")

    print("KERNEL_OK")
</pallas_src>

<mosaic_0001>
module attributes {stable_mosaic.version = 11 : i64} {
  func.func @lstm_fused_kernel(%arg0: i32, %arg1: i32, %arg2: memref<1x128x4xbf16, #tpu.memory_space<vmem>>, %arg3: memref<4x128xbf16, #tpu.memory_space<vmem>>, %arg4: memref<32x128xbf16, #tpu.memory_space<vmem>>, %arg5: memref<1x128xf32, #tpu.memory_space<vmem>>, %arg6: memref<32x128xbf16, #tpu.memory_space<vmem>>, %arg7: memref<1x128xf32, #tpu.memory_space<vmem>>, %arg8: memref<1x128x128xf32, #tpu.memory_space<vmem>>, %arg9: memref<128x128xf32, #tpu.memory_space<vmem>>, %arg10: memref<128x32xf32, #tpu.memory_space<vmem>>, %arg11: memref<16x32xf32, #tpu.memory_space<vmem>>, %arg12: memref<16x32xf32, #tpu.memory_space<vmem>>) attributes {dimension_semantics = [#tpu.dimension_semantics<parallel>, #tpu.dimension_semantics<arbitrary>], iteration_bounds = array<i64: 1, 1>, scalar_prefetch = 0 : i64, scratch_operands = 4 : i64, tpu.core_type = #tpu.core_type<tc>, window_params = [{transform_indices = @transform_0, window_bounds = array<i64: 1, 128, 4>}, {pipeline_mode = #tpu.pipeline_mode<synchronous>, transform_indices = @transform_1, window_bounds = array<i64: 4, 128>}, {pipeline_mode = #tpu.pipeline_mode<synchronous>, transform_indices = @transform_2, window_bounds = array<i64: 32, 128>}, {pipeline_mode = #tpu.pipeline_mode<synchronous>, transform_indices = @transform_3, window_bounds = array<i64: 1, 128>}, {pipeline_mode = #tpu.pipeline_mode<synchronous>, transform_indices = @transform_4, window_bounds = array<i64: 32, 128>}, {pipeline_mode = #tpu.pipeline_mode<synchronous>, transform_indices = @transform_5, window_bounds = array<i64: 1, 128>}, {transform_indices = @transform_6, window_bounds = array<i64: 1, 128, 128>}]} {
    %c0_i32 = arith.constant 0 : i32
    %0 = arith.cmpi eq, %arg1, %c0_i32 : i32
    %1 = arith.extui %0 : i1 to i32
    %c0_i32_0 = arith.constant 0 : i32
    %2 = arith.cmpi ne, %1, %c0_i32_0 : i32
    scf.if %2 {
      %cst_155 = arith.constant 0.000000e+00 : f32
      %333 = vector.broadcast %cst_155 : f32 to vector<16x32xf32>
      %c0_156 = arith.constant 0 : index
      %c0_157 = arith.constant 0 : index
      %334 = vector.load %arg11[%c0_156, %c0_157] : memref<16x32xf32, #tpu.memory_space<vmem>>, vector<16x32xf32>
      tpu.vector_store %arg11[%c0_156, %c0_157], %333 {strides = array<i32>} : memref<16x32xf32, #tpu.memory_space<vmem>>, vector<16x32xf32>,
      %cst_158 = arith.constant 0.000000e+00 : f32
      %335 = vector.broadcast %cst_158 : f32 to vector<16x32xf32>
      %c0_159 = arith.constant 0 : index
      %c0_160 = arith.constant 0 : index
      %336 = vector.load %arg12[%c0_159, %c0_160] : memref<16x32xf32, #tpu.memory_space<vmem>>, vector<16x32xf32>
      tpu.vector_store %arg12[%c0_159, %c0_160], %335 {strides = array<i32>} : memref<16x32xf32, #tpu.memory_space<vmem>>, vector<16x32xf32>,
    } else {
    }
    %c0 = arith.constant 0 : index
    %c0_1 = arith.constant 0 : index
    %c0_2 = arith.constant 0 : index
    %3 = vector.load %arg2[%c0, %c0_1, %c0_2] : memref<1x128x4xbf16, #tpu.memory_space<vmem>>, vector<1x128x4xbf16>
    %4 = vector.shape_cast %3 : vector<1x128x4xbf16> to vector<128x4xbf16>
    %c0_3 = arith.constant 0 : index
    %c0_4 = arith.constant 0 : index
    %5 = vector.load %arg3[%c0_3, %c0_4] : memref<4x128xbf16, #tpu.memory_space<vmem>>, vector<4x128xbf16>
    %cst = arith.constant dense<0.000000e+00> : vector<128x128xf32>
    %6 = tpu.matmul %4, %5, %cst {dimension_numbers = #tpu.dot_dimension_numbers<[1], [0], [0], [1], [0, 0, 1, 1], [], []>} : vector<128x4xbf16>, vector<4x128xbf16>, vector<128x128xf32> -> vector<128x128xf32>
    %c0_5 = arith.constant 0 : index
    %c0_6 = arith.constant 0 : index
    %7 = vector.load %arg5[%c0_5, %c0_6] : memref<1x128xf32, #tpu.memory_space<vmem>>, vector<1x128xf32>
    %8 = vector.broadcast %7 : vector<1x128xf32> to vector<128x128xf32>
    %9 = arith.addf %6, %8 : vector<128x128xf32>
    %c0_7 = arith.constant 0 : index
    %c0_8 = arith.constant 0 : index
    %10 = vector.load %arg9[%c0_7, %c0_8] : memref<128x128xf32, #tpu.memory_space<vmem>>, vector<128x128xf32>
    tpu.vector_store %arg9[%c0_7, %c0_8], %9 {strides = array<i32>} : memref<128x128xf32, #tpu.memory_space<vmem>>, vector<128x128xf32>,
    %c0_i32_9 = arith.constant 0 : i32
    %c16_i32 = arith.constant 16 : i32
    %11 = arith.muli %c0_i32_9, %c16_i32 : i32
    %12 = tpu.assume_multiple %11, 16 : i32
    %13 = arith.index_cast %12 : i32 to index
    %c0_10 = arith.constant 0 : index
    %14 = vector.load %arg9[%13, %c0_10] : memref<128x128xf32, #tpu.memory_space<vmem>>, vector<16x128xf32>
    %c0_11 = arith.constant 0 : index
    %c0_12 = arith.constant 0 : index
    %15 = vector.load %arg11[%c0_11, %c0_12] : memref<16x32xf32, #tpu.memory_space<vmem>>, vector<16x32xf32>
    %16 = arith.truncf %15 : vector<16x32xf32> to vector<16x32xbf16>
    %c0_13 = arith.constant 0 : index
    %c0_14 = arith.constant 0 : index
    %17 = vector.load %arg4[%c0_13, %c0_14] : memref<32x128xbf16, #tpu.memory_space<vmem>>, vector<32x128xbf16>
    %cst_15 = arith.constant dense<0.000000e+00> : vector<16x128xf32>
    %18 = tpu.matmul %16, %17, %cst_15 {dimension_numbers = #tpu.dot_dimension_numbers<[1], [0], [0], [1], [0, 0, 1, 1], [], []>} : vector<16x32xbf16>, vector<32x128xbf16>, vector<16x128xf32> -> vector<16x128xf32>
    %19 = arith.addf %14, %18 : vector<16x128xf32>
    %20 = vector.extract_strided_slice %19 {offsets = [0, 0], sizes = [16, 32], strides = [1, 1]} : vector<16x128xf32> to vector<16x32xf32>
    %21 = arith.negf %20 : vector<16x32xf32>
    %22 = math.exp %21 : vector<16x32xf32>
    %cst_16 = arith.constant 1.000000e+00 : f32
    %23 = vector.broadcast %cst_16 : f32 to vector<16x32xf32>
    %24 = arith.addf %23, %22 : vector<16x32xf32>
    %25 = arith.divf %23, %24 : vector<16x32xf32>
    %26 = vector.extract_strided_slice %19 {offsets = [0, 32], sizes = [16, 32], strides = [1, 1]} : vector<16x128xf32> to vector<16x32xf32>
    %27 = arith.negf %26 : vector<16x32xf32>
    %28 = math.exp %27 : vector<16x32xf32>
    %cst_17 = arith.constant 1.000000e+00 : f32
    %29 = vector.broadcast %cst_17 : f32 to vector<16x32xf32>
    %30 = arith.addf %29, %28 : vector<16x32xf32>
    %31 = arith.divf %29, %30 : vector<16x32xf32>
    %32 = vector.extract_strided_slice %19 {offsets = [0, 64], sizes = [16, 32], strides = [1, 1]} : vector<16x128xf32> to vector<16x32xf32>
    %33 = math.tanh %32 : vector<16x32xf32>
    %34 = vector.extract_strided_slice %19 {offsets = [0, 96], sizes = [16, 32], strides = [1, 1]} : vector<16x128xf32> to vector<16x32xf32>
    %35 = arith.negf %34 : vector<16x32xf32>
    %36 = math.exp %35 : vector<16x32xf32>
    %cst_18 = arith.constant 1.000000e+00 : f32
    %37 = vector.broadcast %cst_18 : f32 to vector<16x32xf32>
    %38 = arith.addf %37, %36 : vector<16x32xf32>
    %39 = arith.divf %37, %38 : vector<16x32xf32>
    %c0_19 = arith.constant 0 : index
    %c0_20 = arith.constant 0 : index
    %40 = vector.load %arg12[%c0_19, %c0_20] : memref<16x32xf32, #tpu.memory_space<vmem>>, vector<16x32xf32>
    %41 = arith.mulf %31, %40 : vector<16x32xf32>
    %42 = arith.mulf %25, %33 : vector<16x32xf32>
    %43 = arith.addf %41, %42 : vector<16x32xf32>
    %44 = math.tanh %43 : vector<16x32xf32>
    %45 = arith.mulf %39, %44 : vector<16x32xf32>
    %c0_21 = arith.constant 0 : index
    %c0_22 = arith.constant 0 : index
    %46 = vector.load %arg12[%c0_21, %c0_22] : memref<16x32xf32, #tpu.memory_space<vmem>>, vector<16x32xf32>
    tpu.vector_store %arg12[%c0_21, %c0_22], %43 {strides = array<i32>} : memref<16x32xf32, #tpu.memory_space<vmem>>, vector<16x32xf32>,
    %c0_23 = arith.constant 0 : index
    %c0_24 = arith.constant 0 : index
    %47 = vector.load %arg11[%c0_23, %c0_24] : memref<16x32xf32, #tpu.memory_space<vmem>>, vector<16x32xf32>
    tpu.vector_store %arg11[%c0_23, %c0_24], %45 {strides = array<i32>} : memref<16x32xf32, #tpu.memory_space<vmem>>, vector<16x32xf32>,
    %48 = arith.index_cast %12 : i32 to index
    %c0_25 = arith.constant 0 : index
    %49 = vector.load %arg10[%48, %c0_25] : memref<128x32xf32, #tpu.memory_space<vmem>>, vector<16x32xf32>
    tpu.vector_store %arg10[%48, %c0_25], %45 {strides = array<i32>} : memref<128x32xf32, #tpu.memory_space<vmem>>, vector<16x32xf32>,
    %c1_i32 = arith.constant 1 : i32
    %c16_i32_26 = arith.constant 16 : i32
    %50 = arith.muli %c1_i32, %c16_i32_26 : i32
    %51 = tpu.assume_multiple %50, 16 : i32
    %52 = arith.index_cast %51 : i32 to index
    %c0_27 = arith.constant 0 : index
    %53 = vector.load %arg9[%52, %c0_27] : memref<128x128xf32, #tpu.memory_space<vmem>>, vector<16x128xf32>
    %c0_28 = arith.constant 0 : index
    %c0_29 = arith.constant 0 : index
    %54 = vector.load %arg11[%c0_28, %c0_29] : memref<16x32xf32, #tpu.memory_space<vmem>>, vector<16x32xf32>
    %55 = arith.truncf %54 : vector<16x32xf32> to vector<16x32xbf16>
    %c0_30 = arith.constant 0 : index
    %c0_31 = arith.constant 0 : index
    %56 = vector.load %arg4[%c0_30, %c0_31] : memref<32x128xbf16, #tpu.memory_space<vmem>>, vector<32x128xbf16>
    %cst_32 = arith.constant dense<0.000000e+00> : vector<16x128xf32>
    %57 = tpu.matmul %55, %56, %cst_32 {dimension_numbers = #tpu.dot_dimension_numbers<[1], [0], [0], [1], [0, 0, 1, 1], [], []>} : vector<16x32xbf16>, vector<32x128xbf16>, vector<16x128xf32> -> vector<16x128xf32>
    %58 = arith.addf %53, %57 : vector<16x128xf32>
    %59 = vector.extract_strided_slice %58 {offsets = [0, 0], sizes = [16, 32], strides = [1, 1]} : vector<16x128xf32> to vector<16x32xf32>
    %60 = arith.negf %59 : vector<16x32xf32>
    %61 = math.exp %60 : vector<16x32xf32>
    %cst_33 = arith.constant 1.000000e+00 : f32
    %62 = vector.broadcast %cst_33 : f32 to vector<16x32xf32>
    %63 = arith.addf %62, %61 : vector<16x32xf32>
    %64 = arith.divf %62, %63 : vector<16x32xf32>
    %65 = vector.extract_strided_slice %58 {offsets = [0, 32], sizes = [16, 32], strides = [1, 1]} : vector<16x128xf32> to vector<16x32xf32>
    %66 = arith.negf %65 : vector<16x32xf32>
    %67 = math.exp %66 : vector<16x32xf32>
    %cst_34 = arith.constant 1.000000e+00 : f32
    %68 = vector.broadcast %cst_34 : f32 to vector<16x32xf32>
    %69 = arith.addf %68, %67 : vector<16x32xf32>
    %70 = arith.divf %68, %69 : vector<16x32xf32>
    %71 = vector.extract_strided_slice %58 {offsets = [0, 64], sizes = [16, 32], strides = [1, 1]} : vector<16x128xf32> to vector<16x32xf32>
    %72 = math.tanh %71 : vector<16x32xf32>
    %73 = vector.extract_strided_slice %58 {offsets = [0, 96], sizes = [16, 32], strides = [1, 1]} : vector<16x128xf32> to vector<16x32xf32>
    %74 = arith.negf %73 : vector<16x32xf32>
    %75 = math.exp %74 : vector<16x32xf32>
    %cst_35 = arith.constant 1.000000e+00 : f32
    %76 = vector.broadcast %cst_35 : f32 to vector<16x32xf32>
    %77 = arith.addf %76, %75 : vector<16x32xf32>
    %78 = arith.divf %76, %77 : vector<16x32xf32>
    %c0_36 = arith.constant 0 : index
    %c0_37 = arith.constant 0 : index
    %79 = vector.load %arg12[%c0_36, %c0_37] : memref<16x32xf32, #tpu.memory_space<vmem>>, vector<16x32xf32>
    %80 = arith.mulf %70, %79 : vector<16x32xf32>
    %81 = arith.mulf %64, %72 : vector<16x32xf32>
    %82 = arith.addf %80, %81 : vector<16x32xf32>
    %83 = math.tanh %82 : vector<16x32xf32>
    %84 = arith.mulf %78, %83 : vector<16x32xf32>
    %c0_38 = arith.constant 0 : index
    %c0_39 = arith.constant 0 : index
    %85 = vector.load %arg12[%c0_38, %c0_39] : memref<16x32xf32, #tpu.memory_space<vmem>>, vector<16x32xf32>
    tpu.vector_store %arg12[%c0_38, %c0_39], %82 {strides = array<i32>} : memref<16x32xf32, #tpu.memory_space<vmem>>, vector<16x32xf32>,
    %c0_40 = arith.constant 0 : index
    %c0_41 = arith.constant 0 : index
    %86 = vector.load %arg11[%c0_40, %c0_41] : memref<16x32xf32, #tpu.memory_space<vmem>>, vector<16x32xf32>
    tpu.vector_store %arg11[%c0_40, %c0_41], %84 {strides = array<i32>} : memref<16x32xf32, #tpu.memory_space<vmem>>, vector<16x32xf32>,
    %87 = arith.index_cast %51 : i32 to index
    %c0_42 = arith.constant 0 : index
    %88 = vector.load %arg10[%87, %c0_42] : memref<128x32xf32, #tpu.memory_space<vmem>>, vector<16x32xf32>
    tpu.vector_store %arg10[%87, %c0_42], %84 {strides = array<i32>} : memref<128x32xf32, #tpu.memory_space<vmem>>, vector<16x32xf32>,
    %c2_i32 = arith.constant 2 : i32
    %c16_i32_43 = arith.constant 16 : i32
    %89 = arith.muli %c2_i32, %c16_i32_43 : i32
    %90 = tpu.assume_multiple %89, 16 : i32
    %91 = arith.index_cast %90 : i32 to index
    %c0_44 = arith.constant 0 : index
    %92 = vector.load %arg9[%91, %c0_44] : memref<128x128xf32, #tpu.memory_space<vmem>>, vector<16x128xf32>
    %c0_45 = arith.constant 0 : index
    %c0_46 = arith.constant 0 : index
    %93 = vector.load %arg11[%c0_45, %c0_46] : memref<16x32xf32, #tpu.memory_space<vmem>>, vector<16x32xf32>
    %94 = arith.truncf %93 : vector<16x32xf32> to vector<16x32xbf16>
    %c0_47 = arith.constant 0 : index
    %c0_48 = arith.constant 0 : index
    %95 = vector.load %arg4[%c0_47, %c0_48] : memref<32x128xbf16, #tpu.memory_space<vmem>>, vector<32x128xbf16>
    %cst_49 = arith.constant dense<0.000000e+00> : vector<16x128xf32>
    %96 = tpu.matmul %94, %95, %cst_49 {dimension_numbers = #tpu.dot_dimension_numbers<[1], [0], [0], [1], [0, 0, 1, 1], [], []>} : vector<16x32xbf16>, vector<32x128xbf16>, vector<16x128xf32> -> vector<16x128xf32>
    %97 = arith.addf %92, %96 : vector<16x128xf32>
    %98 = vector.extract_strided_slice %97 {offsets = [0, 0], sizes = [16, 32], strides = [1, 1]} : vector<16x128xf32> to vector<16x32xf32>
    %99 = arith.negf %98 : vector<16x32xf32>
    %100 = math.exp %99 : vector<16x32xf32>
    %cst_50 = arith.constant 1.000000e+00 : f32
    %101 = vector.broadcast %cst_50 : f32 to vector<16x32xf32>
    %102 = arith.addf %101, %100 : vector<16x32xf32>
    %103 = arith.divf %101, %102 : vector<16x32xf32>
    %104 = vector.extract_strided_slice %97 {offsets = [0, 32], sizes = [16, 32], strides = [1, 1]} : vector<16x128xf32> to vector<16x32xf32>
    %105 = arith.negf %104 : vector<16x32xf32>
    %106 = math.exp %105 : vector<16x32xf32>
    %cst_51 = arith.constant 1.000000e+00 : f32
    %107 = vector.broadcast %cst_51 : f32 to vector<16x32xf32>
    %108 = arith.addf %107, %106 : vector<16x32xf32>
    %109 = arith.divf %107, %108 : vector<16x32xf32>
    %110 = vector.extract_strided_slice %97 {offsets = [0, 64], sizes = [16, 32], strides = [1, 1]} : vector<16x128xf32> to vector<16x32xf32>
    %111 = math.tanh %110 : vector<16x32xf32>
    %112 = vector.extract_strided_slice %97 {offsets = [0, 96], sizes = [16, 32], strides = [1, 1]} : vector<16x128xf32> to vector<16x32xf32>
    %113 = arith.negf %112 : vector<16x32xf32>
    %114 = math.exp %113 : vector<16x32xf32>
    %cst_52 = arith.constant 1.000000e+00 : f32
    %115 = vector.broadcast %cst_52 : f32 to vector<16x32xf32>
    %116 = arith.addf %115, %114 : vector<16x32xf32>
    %117 = arith.divf %115, %116 : vector<16x32xf32>
    %c0_53 = arith.constant 0 : index
    %c0_54 = arith.constant 0 : index
    %118 = vector.load %arg12[%c0_53, %c0_54] : memref<16x32xf32, #tpu.memory_space<vmem>>, vector<16x32xf32>
    %119 = arith.mulf %109, %118 : vector<16x32xf32>
    %120 = arith.mulf %103, %111 : vector<16x32xf32>
    %121 = arith.addf %119, %120 : vector<16x32xf32>
    %122 = math.tanh %121 : vector<16x32xf32>
    %123 = arith.mulf %117, %122 : vector<16x32xf32>
    %c0_55 = arith.constant 0 : index
    %c0_56 = arith.constant 0 : index
    %124 = vector.load %arg12[%c0_55, %c0_56] : memref<16x32xf32, #tpu.memory_space<vmem>>, vector<16x32xf32>
    tpu.vector_store %arg12[%c0_55, %c0_56], %121 {strides = array<i32>} : memref<16x32xf32, #tpu.memory_space<vmem>>, vector<16x32xf32>,
    %c0_57 = arith.constant 0 : index
    %c0_58 = arith.constant 0 : index
    %125 = vector.load %arg11[%c0_57, %c0_58] : memref<16x32xf32, #tpu.memory_space<vmem>>, vector<16x32xf32>
    tpu.vector_store %arg11[%c0_57, %c0_58], %123 {strides = array<i32>} : memref<16x32xf32, #tpu.memory_space<vmem>>, vector<16x32xf32>,
    %126 = arith.index_cast %90 : i32 to index
    %c0_59 = arith.constant 0 : index
    %127 = vector.load %arg10[%126, %c0_59] : memref<128x32xf32, #tpu.memory_space<vmem>>, vector<16x32xf32>
    tpu.vector_store %arg10[%126, %c0_59], %123 {strides = array<i32>} : memref<128x32xf32, #tpu.memory_space<vmem>>, vector<16x32xf32>,
    %c3_i32 = arith.constant 3 : i32
    %c16_i32_60 = arith.constant 16 : i32
    %128 = arith.muli %c3_i32, %c16_i32_60 : i32
    %129 = tpu.assume_multiple %128, 16 : i32
    %130 = arith.index_cast %129 : i32 to index
    %c0_61 = arith.constant 0 : index
    %131 = vector.load %arg9[%130, %c0_61] : memref<128x128xf32, #tpu.memory_space<vmem>>, vector<16x128xf32>
    %c0_62 = arith.constant 0 : index
    %c0_63 = arith.constant 0 : index
    %132 = vector.load %arg11[%c0_62, %c0_63] : memref<16x32xf32, #tpu.memory_space<vmem>>, vector<16x32xf32>
    %133 = arith.truncf %132 : vector<16x32xf32> to vector<16x32xbf16>
    %c0_64 = arith.constant 0 : index
    %c0_65 = arith.constant 0 : index
    %134 = vector.load %arg4[%c0_64, %c0_65] : memref<32x128xbf16, #tpu.memory_space<vmem>>, vector<32x128xbf16>
    %cst_66 = arith.constant dense<0.000000e+00> : vector<16x128xf32>
    %135 = tpu.matmul %133, %134, %cst_66 {dimension_numbers = #tpu.dot_dimension_numbers<[1], [0], [0], [1], [0, 0, 1, 1], [], []>} : vector<16x32xbf16>, vector<32x128xbf16>, vector<16x128xf32> -> vector<16x128xf32>
    %136 = arith.addf %131, %135 : vector<16x128xf32>
    %137 = vector.extract_strided_slice %136 {offsets = [0, 0], sizes = [16, 32], strides = [1, 1]} : vector<16x128xf32> to vector<16x32xf32>
    %138 = arith.negf %137 : vector<16x32xf32>
    %139 = math.exp %138 : vector<16x32xf32>
    %cst_67 = arith.constant 1.000000e+00 : f32
    %140 = vector.broadcast %cst_67 : f32 to vector<16x32xf32>
    %141 = arith.addf %140, %139 : vector<16x32xf32>
    %142 = arith.divf %140, %141 : vector<16x32xf32>
    %143 = vector.extract_strided_slice %136 {offsets = [0, 32], sizes = [16, 32], strides = [1, 1]} : vector<16x128xf32> to vector<16x32xf32>
    %144 = arith.negf %143 : vector<16x32xf32>
    %145 = math.exp %144 : vector<16x32xf32>
    %cst_68 = arith.constant 1.000000e+00 : f32
    %146 = vector.broadcast %cst_68 : f32 to vector<16x32xf32>
    %147 = arith.addf %146, %145 : vector<16x32xf32>
    %148 = arith.divf %146, %147 : vector<16x32xf32>
    %149 = vector.extract_strided_slice %136 {offsets = [0, 64], sizes = [16, 32], strides = [1, 1]} : vector<16x128xf32> to vector<16x32xf32>
    %150 = math.tanh %149 : vector<16x32xf32>
    %151 = vector.extract_strided_slice %136 {offsets = [0, 96], sizes = [16, 32], strides = [1, 1]} : vector<16x128xf32> to vector<16x32xf32>
    %152 = arith.negf %151 : vector<16x32xf32>
    %153 = math.exp %152 : vector<16x32xf32>
    %cst_69 = arith.constant 1.000000e+00 : f32
    %154 = vector.broadcast %cst_69 : f32 to vector<16x32xf32>
    %155 = arith.addf %154, %153 : vector<16x32xf32>
    %156 = arith.divf %154, %155 : vector<16x32xf32>
    %c0_70 = arith.constant 0 : index
    %c0_71 = arith.constant 0 : index
    %157 = vector.load %arg12[%c0_70, %c0_71] : memref<16x32xf32, #tpu.memory_space<vmem>>, vector<16x32xf32>
    %158 = arith.mulf %148, %157 : vector<16x32xf32>
    %159 = arith.mulf %142, %150 : vector<16x32xf32>
    %160 = arith.addf %158, %159 : vector<16x32xf32>
    %161 = math.tanh %160 : vector<16x32xf32>
    %162 = arith.mulf %156, %161 : vector<16x32xf32>
    %c0_72 = arith.constant 0 : index
    %c0_73 = arith.constant 0 : index
    %163 = vector.load %arg12[%c0_72, %c0_73] : memref<16x32xf32, #tpu.memory_space<vmem>>, vector<16x32xf32>
    tpu.vector_store %arg12[%c0_72, %c0_73], %160 {strides = array<i32>} : memref<16x32xf32, #tpu.memory_space<vmem>>, vector<16x32xf32>,
    %c0_74 = arith.constant 0 : index
    %c0_75 = arith.constant 0 : index
    %164 = vector.load %arg11[%c0_74, %c0_75] : memref<16x32xf32, #tpu.memory_space<vmem>>, vector<16x32xf32>
    tpu.vector_store %arg11[%c0_74, %c0_75], %162 {strides = array<i32>} : memref<16x32xf32, #tpu.memory_space<vmem>>, vector<16x32xf32>,
    %165 = arith.index_cast %129 : i32 to index
    %c0_76 = arith.constant 0 : index
    %166 = vector.load %arg10[%165, %c0_76] : memref<128x32xf32, #tpu.memory_space<vmem>>, vector<16x32xf32>
    tpu.vector_store %arg10[%165, %c0_76], %162 {strides = array<i32>} : memref<128x32xf32, #tpu.memory_space<vmem>>, vector<16x32xf32>,
    %c4_i32 = arith.constant 4 : i32
    %c16_i32_77 = arith.constant 16 : i32
    %167 = arith.muli %c4_i32, %c16_i32_77 : i32
    %168 = tpu.assume_multiple %167, 16 : i32
    %169 = arith.index_cast %168 : i32 to index
    %c0_78 = arith.constant 0 : index
    %170 = vector.load %arg9[%169, %c0_78] : memref<128x128xf32, #tpu.memory_space<vmem>>, vector<16x128xf32>
    %c0_79 = arith.constant 0 : index
    %c0_80 = arith.constant 0 : index
    %171 = vector.load %arg11[%c0_79, %c0_80] : memref<16x32xf32, #tpu.memory_space<vmem>>, vector<16x32xf32>
    %172 = arith.truncf %171 : vector<16x32xf32> to vector<16x32xbf16>
    %c0_81 = arith.constant 0 : index
    %c0_82 = arith.constant 0 : index
    %173 = vector.load %arg4[%c0_81, %c0_82] : memref<32x128xbf16, #tpu.memory_space<vmem>>, vector<32x128xbf16>
    %cst_83 = arith.constant dense<0.000000e+00> : vector<16x128xf32>
    %174 = tpu.matmul %172, %173, %cst_83 {dimension_numbers = #tpu.dot_dimension_numbers<[1], [0], [0], [1], [0, 0, 1, 1], [], []>} : vector<16x32xbf16>, vector<32x128xbf16>, vector<16x128xf32> -> vector<16x128xf32>
    %175 = arith.addf %170, %174 : vector<16x128xf32>
    %176 = vector.extract_strided_slice %175 {offsets = [0, 0], sizes = [16, 32], strides = [1, 1]} : vector<16x128xf32> to vector<16x32xf32>
    %177 = arith.negf %176 : vector<16x32xf32>
    %178 = math.exp %177 : vector<16x32xf32>
    %cst_84 = arith.constant 1.000000e+00 : f32
    %179 = vector.broadcast %cst_84 : f32 to vector<16x32xf32>
    %180 = arith.addf %179, %178 : vector<16x32xf32>
    %181 = arith.divf %179, %180 : vector<16x32xf32>
    %182 = vector.extract_strided_slice %175 {offsets = [0, 32], sizes = [16, 32], strides = [1, 1]} : vector<16x128xf32> to vector<16x32xf32>
    %183 = arith.negf %182 : vector<16x32xf32>
    %184 = math.exp %183 : vector<16x32xf32>
    %cst_85 = arith.constant 1.000000e+00 : f32
    %185 = vector.broadcast %cst_85 : f32 to vector<16x32xf32>
    %186 = arith.addf %185, %184 : vector<16x32xf32>
    %187 = arith.divf %185, %186 : vector<16x32xf32>
    %188 = vector.extract_strided_slice %175 {offsets = [0, 64], sizes = [16, 32], strides = [1, 1]} : vector<16x128xf32> to vector<16x32xf32>
    %189 = math.tanh %188 : vector<16x32xf32>
    %190 = vector.extract_strided_slice %175 {offsets = [0, 96], sizes = [16, 32], strides = [1, 1]} : vector<16x128xf32> to vector<16x32xf32>
    %191 = arith.negf %190 : vector<16x32xf32>
    %192 = math.exp %191 : vector<16x32xf32>
    %cst_86 = arith.constant 1.000000e+00 : f32
    %193 = vector.broadcast %cst_86 : f32 to vector<16x32xf32>
    %194 = arith.addf %193, %192 : vector<16x32xf32>
    %195 = arith.divf %193, %194 : vector<16x32xf32>
    %c0_87 = arith.constant 0 : index
    %c0_88 = arith.constant 0 : index
    %196 = vector.load %arg12[%c0_87, %c0_88] : memref<16x32xf32, #tpu.memory_space<vmem>>, vector<16x32xf32>
    %197 = arith.mulf %187, %196 : vector<16x32xf32>
    %198 = arith.mulf %181, %189 : vector<16x32xf32>
    %199 = arith.addf %197, %198 : vector<16x32xf32>
    %200 = math.tanh %199 : vector<16x32xf32>
    %201 = arith.mulf %195, %200 : vector<16x32xf32>
    %c0_89 = arith.constant 0 : index
    %c0_90 = arith.constant 0 : index
    %202 = vector.load %arg12[%c0_89, %c0_90] : memref<16x32xf32, #tpu.memory_space<vmem>>, vector<16x32xf32>
    tpu.vector_store %arg12[%c0_89, %c0_90], %199 {strides = array<i32>} : memref<16x32xf32, #tpu.memory_space<vmem>>, vector<16x32xf32>,
    %c0_91 = arith.constant 0 : index
    %c0_92 = arith.constant 0 : index
    %203 = vector.load %arg11[%c0_91, %c0_92] : memref<16x32xf32, #tpu.memory_space<vmem>>, vector<16x32xf32>
    tpu.vector_store %arg11[%c0_91, %c0_92], %201 {strides = array<i32>} : memref<16x32xf32, #tpu.memory_space<vmem>>, vector<16x32xf32>,
    %204 = arith.index_cast %168 : i32 to index
    %c0_93 = arith.constant 0 : index
    %205 = vector.load %arg10[%204, %c0_93] : memref<128x32xf32, #tpu.memory_space<vmem>>, vector<16x32xf32>
    tpu.vector_store %arg10[%204, %c0_93], %201 {strides = array<i32>} : memref<128x32xf32, #tpu.memory_space<vmem>>, vector<16x32xf32>,
    %c5_i32 = arith.constant 5 : i32
    %c16_i32_94 = arith.constant 16 : i32
    %206 = arith.muli %c5_i32, %c16_i32_94 : i32
    %207 = tpu.assume_multiple %206, 16 : i32
    %208 = arith.index_cast %207 : i32 to index
    %c0_95 = arith.constant 0 : index
    %209 = vector.load %arg9[%208, %c0_95] : memref<128x128xf32, #tpu.memory_space<vmem>>, vector<16x128xf32>
    %c0_96 = arith.constant 0 : index
    %c0_97 = arith.constant 0 : index
    %210 = vector.load %arg11[%c0_96, %c0_97] : memref<16x32xf32, #tpu.memory_space<vmem>>, vector<16x32xf32>
    %211 = arith.truncf %210 : vector<16x32xf32> to vector<16x32xbf16>
    %c0_98 = arith.constant 0 : index
    %c0_99 = arith.constant 0 : index
    %212 = vector.load %arg4[%c0_98, %c0_99] : memref<32x128xbf16, #tpu.memory_space<vmem>>, vector<32x128xbf16>
    %cst_100 = arith.constant dense<0.000000e+00> : vector<16x128xf32>
    %213 = tpu.matmul %211, %212, %cst_100 {dimension_numbers = #tpu.dot_dimension_numbers<[1], [0], [0], [1], [0, 0, 1, 1], [], []>} : vector<16x32xbf16>, vector<32x128xbf16>, vector<16x128xf32> -> vector<16x128xf32>
    %214 = arith.addf %209, %213 : vector<16x128xf32>
    %215 = vector.extract_strided_slice %214 {offsets = [0, 0], sizes = [16, 32], strides = [1, 1]} : vector<16x128xf32> to vector<16x32xf32>
    %216 = arith.negf %215 : vector<16x32xf32>
    %217 = math.exp %216 : vector<16x32xf32>
    %cst_101 = arith.constant 1.000000e+00 : f32
    %218 = vector.broadcast %cst_101 : f32 to vector<16x32xf32>
    %219 = arith.addf %218, %217 : vector<16x32xf32>
    %220 = arith.divf %218, %219 : vector<16x32xf32>
    %221 = vector.extract_strided_slice %214 {offsets = [0, 32], sizes = [16, 32], strides = [1, 1]} : vector<16x128xf32> to vector<16x32xf32>
    %222 = arith.negf %221 : vector<16x32xf32>
    %223 = math.exp %222 : vector<16x32xf32>
    %cst_102 = arith.constant 1.000000e+00 : f32
    %224 = vector.broadcast %cst_102 : f32 to vector<16x32xf32>
    %225 = arith.addf %224, %223 : vector<16x32xf32>
    %226 = arith.divf %224, %225 : vector<16x32xf32>
    %227 = vector.extract_strided_slice %214 {offsets = [0, 64], sizes = [16, 32], strides = [1, 1]} : vector<16x128xf32> to vector<16x32xf32>
    %228 = math.tanh %227 : vector<16x32xf32>
    %229 = vector.extract_strided_slice %214 {offsets = [0, 96], sizes = [16, 32], strides = [1, 1]} : vector<16x128xf32> to vector<16x32xf32>
    %230 = arith.negf %229 : vector<16x32xf32>
    %231 = math.exp %230 : vector<16x32xf32>
    %cst_103 = arith.constant 1.000000e+00 : f32
    %232 = vector.broadcast %cst_103 : f32 to vector<16x32xf32>
    %233 = arith.addf %232, %231 : vector<16x32xf32>
    %234 = arith.divf %232, %233 : vector<16x32xf32>
    %c0_104 = arith.constant 0 : index
    %c0_105 = arith.constant 0 : index
    %235 = vector.load %arg12[%c0_104, %c0_105] : memref<16x32xf32, #tpu.memory_space<vmem>>, vector<16x32xf32>
    %236 = arith.mulf %226, %235 : vector<16x32xf32>
    %237 = arith.mulf %220, %228 : vector<16x32xf32>
    %238 = arith.addf %236, %237 : vector<16x32xf32>
    %239 = math.tanh %238 : vector<16x32xf32>
    %240 = arith.mulf %234, %239 : vector<16x32xf32>
    %c0_106 = arith.constant 0 : index
    %c0_107 = arith.constant 0 : index
    %241 = vector.load %arg12[%c0_106, %c0_107] : memref<16x32xf32, #tpu.memory_space<vmem>>, vector<16x32xf32>
    tpu.vector_store %arg12[%c0_106, %c0_107], %238 {strides = array<i32>} : memref<16x32xf32, #tpu.memory_space<vmem>>, vector<16x32xf32>,
    %c0_108 = arith.constant 0 : index
    %c0_109 = arith.constant 0 : index
    %242 = vector.load %arg11[%c0_108, %c0_109] : memref<16x32xf32, #tpu.memory_space<vmem>>, vector<16x32xf32>
    tpu.vector_store %arg11[%c0_108, %c0_109], %240 {strides = array<i32>} : memref<16x32xf32, #tpu.memory_space<vmem>>, vector<16x32xf32>,
    %243 = arith.index_cast %207 : i32 to index
    %c0_110 = arith.constant 0 : index
    %244 = vector.load %arg10[%243, %c0_110] : memref<128x32xf32, #tpu.memory_space<vmem>>, vector<16x32xf32>
    tpu.vector_store %arg10[%243, %c0_110], %240 {strides = array<i32>} : memref<128x32xf32, #tpu.memory_space<vmem>>, vector<16x32xf32>,
    %c6_i32 = arith.constant 6 : i32
    %c16_i32_111 = arith.constant 16 : i32
    %245 = arith.muli %c6_i32, %c16_i32_111 : i32
    %246 = tpu.assume_multiple %245, 16 : i32
    %247 = arith.index_cast %246 : i32 to index
    %c0_112 = arith.constant 0 : index
    %248 = vector.load %arg9[%247, %c0_112] : memref<128x128xf32, #tpu.memory_space<vmem>>, vector<16x128xf32>
    %c0_113 = arith.constant 0 : index
    %c0_114 = arith.constant 0 : index
    %249 = vector.load %arg11[%c0_113, %c0_114] : memref<16x32xf32, #tpu.memory_space<vmem>>, vector<16x32xf32>
    %250 = arith.truncf %249 : vector<16x32xf32> to vector<16x32xbf16>
    %c0_115 = arith.constant 0 : index
    %c0_116 = arith.constant 0 : index
    %251 = vector.load %arg4[%c0_115, %c0_116] : memref<32x128xbf16, #tpu.memory_space<vmem>>, vector<32x128xbf16>
    %cst_117 = arith.constant dense<0.000000e+00> : vector<16x128xf32>
    %252 = tpu.matmul %250, %251, %cst_117 {dimension_numbers = #tpu.dot_dimension_numbers<[1], [0], [0], [1], [0, 0, 1, 1], [], []>} : vector<16x32xbf16>, vector<32x128xbf16>, vector<16x128xf32> -> vector<16x128xf32>
    %253 = arith.addf %248, %252 : vector<16x128xf32>
    %254 = vector.extract_strided_slice %253 {offsets = [0, 0], sizes = [16, 32], strides = [1, 1]} : vector<16x128xf32> to vector<16x32xf32>
    %255 = arith.negf %254 : vector<16x32xf32>
    %256 = math.exp %255 : vector<16x32xf32>
    %cst_118 = arith.constant 1.000000e+00 : f32
    %257 = vector.broadcast %cst_118 : f32 to vector<16x32xf32>
    %258 = arith.addf %257, %256 : vector<16x32xf32>
    %259 = arith.divf %257, %258 : vector<16x32xf32>
    %260 = vector.extract_strided_slice %253 {offsets = [0, 32], sizes = [16, 32], strides = [1, 1]} : vector<16x128xf32> to vector<16x32xf32>
    %261 = arith.negf %260 : vector<16x32xf32>
    %262 = math.exp %261 : vector<16x32xf32>
    %cst_119 = arith.constant 1.000000e+00 : f32
    %263 = vector.broadcast %cst_119 : f32 to vector<16x32xf32>
    %264 = arith.addf %263, %262 : vector<16x32xf32>
    %265 = arith.divf %263, %264 : vector<16x32xf32>
    %266 = vector.extract_strided_slice %253 {offsets = [0, 64], sizes = [16, 32], strides = [1, 1]} : vector<16x128xf32> to vector<16x32xf32>
    %267 = math.tanh %266 : vector<16x32xf32>
    %268 = vector.extract_strided_slice %253 {offsets = [0, 96], sizes = [16, 32], strides = [1, 1]} : vector<16x128xf32> to vector<16x32xf32>
    %269 = arith.negf %268 : vector<16x32xf32>
    %270 = math.exp %269 : vector<16x32xf32>
    %cst_120 = arith.constant 1.000000e+00 : f32
    %271 = vector.broadcast %cst_120 : f32 to vector<16x32xf32>
    %272 = arith.addf %271, %270 : vector<16x32xf32>
    %273 = arith.divf %271, %272 : vector<16x32xf32>
    %c0_121 = arith.constant 0 : index
    %c0_122 = arith.constant 0 : index
    %274 = vector.load %arg12[%c0_121, %c0_122] : memref<16x32xf32, #tpu.memory_space<vmem>>, vector<16x32xf32>
    %275 = arith.mulf %265, %274 : vector<16x32xf32>
    %276 = arith.mulf %259, %267 : vector<16x32xf32>
    %277 = arith.addf %275, %276 : vector<16x32xf32>
    %278 = math.tanh %277 : vector<16x32xf32>
    %279 = arith.mulf %273, %278 : vector<16x32xf32>
    %c0_123 = arith.constant 0 : index
    %c0_124 = arith.constant 0 : index
    %280 = vector.load %arg12[%c0_123, %c0_124] : memref<16x32xf32, #tpu.memory_space<vmem>>, vector<16x32xf32>
    tpu.vector_store %arg12[%c0_123, %c0_124], %277 {strides = array<i32>} : memref<16x32xf32, #tpu.memory_space<vmem>>, vector<16x32xf32>,
    %c0_125 = arith.constant 0 : index
    %c0_126 = arith.constant 0 : index
    %281 = vector.load %arg11[%c0_125, %c0_126] : memref<16x32xf32, #tpu.memory_space<vmem>>, vector<16x32xf32>
    tpu.vector_store %arg11[%c0_125, %c0_126], %279 {strides = array<i32>} : memref<16x32xf32, #tpu.memory_space<vmem>>, vector<16x32xf32>,
    %282 = arith.index_cast %246 : i32 to index
    %c0_127 = arith.constant 0 : index
    %283 = vector.load %arg10[%282, %c0_127] : memref<128x32xf32, #tpu.memory_space<vmem>>, vector<16x32xf32>
    tpu.vector_store %arg10[%282, %c0_127], %279 {strides = array<i32>} : memref<128x32xf32, #tpu.memory_space<vmem>>, vector<16x32xf32>,
    %c7_i32 = arith.constant 7 : i32
    %c16_i32_128 = arith.constant 16 : i32
    %284 = arith.muli %c7_i32, %c16_i32_128 : i32
    %285 = tpu.assume_multiple %284, 16 : i32
    %286 = arith.index_cast %285 : i32 to index
    %c0_129 = arith.constant 0 : index
    %287 = vector.load %arg9[%286, %c0_129] : memref<128x128xf32, #tpu.memory_space<vmem>>, vector<16x128xf32>
    %c0_130 = arith.constant 0 : index
    %c0_131 = arith.constant 0 : index
    %288 = vector.load %arg11[%c0_130, %c0_131] : memref<16x32xf32, #tpu.memory_space<vmem>>, vector<16x32xf32>
    %289 = arith.truncf %288 : vector<16x32xf32> to vector<16x32xbf16>
    %c0_132 = arith.constant 0 : index
    %c0_133 = arith.constant 0 : index
    %290 = vector.load %arg4[%c0_132, %c0_133] : memref<32x128xbf16, #tpu.memory_space<vmem>>, vector<32x128xbf16>
    %cst_134 = arith.constant dense<0.000000e+00> : vector<16x128xf32>
    %291 = tpu.matmul %289, %290, %cst_134 {dimension_numbers = #tpu.dot_dimension_numbers<[1], [0], [0], [1], [0, 0, 1, 1], [], []>} : vector<16x32xbf16>, vector<32x128xbf16>, vector<16x128xf32> -> vector<16x128xf32>
    %292 = arith.addf %287, %291 : vector<16x128xf32>
    %293 = vector.extract_strided_slice %292 {offsets = [0, 0], sizes = [16, 32], strides = [1, 1]} : vector<16x128xf32> to vector<16x32xf32>
    %294 = arith.negf %293 : vector<16x32xf32>
    %295 = math.exp %294 : vector<16x32xf32>
    %cst_135 = arith.constant 1.000000e+00 : f32
    %296 = vector.broadcast %cst_135 : f32 to vector<16x32xf32>
    %297 = arith.addf %296, %295 : vector<16x32xf32>
    %298 = arith.divf %296, %297 : vector<16x32xf32>
    %299 = vector.extract_strided_slice %292 {offsets = [0, 32], sizes = [16, 32], strides = [1, 1]} : vector<16x128xf32> to vector<16x32xf32>
    %300 = arith.negf %299 : vector<16x32xf32>
    %301 = math.exp %300 : vector<16x32xf32>
    %cst_136 = arith.constant 1.000000e+00 : f32
    %302 = vector.broadcast %cst_136 : f32 to vector<16x32xf32>
    %303 = arith.addf %302, %301 : vector<16x32xf32>
    %304 = arith.divf %302, %303 : vector<16x32xf32>
    %305 = vector.extract_strided_slice %292 {offsets = [0, 64], sizes = [16, 32], strides = [1, 1]} : vector<16x128xf32> to vector<16x32xf32>
    %306 = math.tanh %305 : vector<16x32xf32>
    %307 = vector.extract_strided_slice %292 {offsets = [0, 96], sizes = [16, 32], strides = [1, 1]} : vector<16x128xf32> to vector<16x32xf32>
    %308 = arith.negf %307 : vector<16x32xf32>
    %309 = math.exp %308 : vector<16x32xf32>
    %cst_137 = arith.constant 1.000000e+00 : f32
    %310 = vector.broadcast %cst_137 : f32 to vector<16x32xf32>
    %311 = arith.addf %310, %309 : vector<16x32xf32>
    %312 = arith.divf %310, %311 : vector<16x32xf32>
    %c0_138 = arith.constant 0 : index
    %c0_139 = arith.constant 0 : index
    %313 = vector.load %arg12[%c0_138, %c0_139] : memref<16x32xf32, #tpu.memory_space<vmem>>, vector<16x32xf32>
    %314 = arith.mulf %304, %313 : vector<16x32xf32>
    %315 = arith.mulf %298, %306 : vector<16x32xf32>
    %316 = arith.addf %314, %315 : vector<16x32xf32>
    %317 = math.tanh %316 : vector<16x32xf32>
    %318 = arith.mulf %312, %317 : vector<16x32xf32>
    %c0_140 = arith.constant 0 : index
    %c0_141 = arith.constant 0 : index
    %319 = vector.load %arg12[%c0_140, %c0_141] : memref<16x32xf32, #tpu.memory_space<vmem>>, vector<16x32xf32>
    tpu.vector_store %arg12[%c0_140, %c0_141], %316 {strides = array<i32>} : memref<16x32xf32, #tpu.memory_space<vmem>>, vector<16x32xf32>,
    %c0_142 = arith.constant 0 : index
    %c0_143 = arith.constant 0 : index
    %320 = vector.load %arg11[%c0_142, %c0_143] : memref<16x32xf32, #tpu.memory_space<vmem>>, vector<16x32xf32>
    tpu.vector_store %arg11[%c0_142, %c0_143], %318 {strides = array<i32>} : memref<16x32xf32, #tpu.memory_space<vmem>>, vector<16x32xf32>,
    %321 = arith.index_cast %285 : i32 to index
    %c0_144 = arith.constant 0 : index
    %322 = vector.load %arg10[%321, %c0_144] : memref<128x32xf32, #tpu.memory_space<vmem>>, vector<16x32xf32>
    tpu.vector_store %arg10[%321, %c0_144], %318 {strides = array<i32>} : memref<128x32xf32, #tpu.memory_space<vmem>>, vector<16x32xf32>,
    %c8_i32 = arith.constant 8 : i32
    %c0_145 = arith.constant 0 : index
    %c0_146 = arith.constant 0 : index
    %323 = vector.load %arg10[%c0_145, %c0_146] : memref<128x32xf32, #tpu.memory_space<vmem>>, vector<128x32xf32>
    %324 = arith.truncf %323 : vector<128x32xf32> to vector<128x32xbf16>
    %c0_147 = arith.constant 0 : index
    %c0_148 = arith.constant 0 : index
    %325 = vector.load %arg6[%c0_147, %c0_148] : memref<32x128xbf16, #tpu.memory_space<vmem>>, vector<32x128xbf16>
    %cst_149 = arith.constant dense<0.000000e+00> : vector<128x128xf32>
    %326 = tpu.matmul %324, %325, %cst_149 {dimension_numbers = #tpu.dot_dimension_numbers<[1], [0], [0], [1], [0, 0, 1, 1], [], []>} : vector<128x32xbf16>, vector<32x128xbf16>, vector<128x128xf32> -> vector<128x128xf32>
    %c0_150 = arith.constant 0 : index
    %c0_151 = arith.constant 0 : index
    %327 = vector.load %arg7[%c0_150, %c0_151] : memref<1x128xf32, #tpu.memory_space<vmem>>, vector<1x128xf32>
    %328 = vector.broadcast %327 : vector<1x128xf32> to vector<128x128xf32>
    %329 = arith.addf %326, %328 : vector<128x128xf32>
    %c0_152 = arith.constant 0 : index
    %c0_153 = arith.constant 0 : index
    %c0_154 = arith.constant 0 : index
    %330 = vector.load %arg8[%c0_152, %c0_153, %c0_154] : memref<1x128x128xf32, #tpu.memory_space<vmem>>, vector<1x128x128xf32>
    %331 = vector.shape_cast %330 : vector<1x128x128xf32> to vector<128x128xf32>
    %332 = vector.shape_cast %329 : vector<128x128xf32> to vector<1x128x128xf32>
    tpu.vector_store %arg8[%c0_152, %c0_153, %c0_154], %332 {strides = array<i32>} : memref<1x128x128xf32, #tpu.memory_space<vmem>>, vector<1x128x128xf32>,
    return
  }
  func.func @transform_0(%arg0: i32, %arg1: i32) -> (i32, i32, i32) {
    %c0_i32 = arith.constant 0 : i32
    %c0_i32_0 = arith.constant 0 : i32
    return %arg0, %arg1, %c0_i32 : i32, i32, i32
  }
  func.func @transform_1(%arg0: i32, %arg1: i32) -> (i32, i32) {
    %c0_i32 = arith.constant 0 : i32
    %c0_i32_0 = arith.constant 0 : i32
    %c0_i32_1 = arith.constant 0 : i32
    return %c0_i32, %c0_i32_0 : i32, i32
  }
  func.func @transform_2(%arg0: i32, %arg1: i32) -> (i32, i32) {
    %c0_i32 = arith.constant 0 : i32
    %c0_i32_0 = arith.constant 0 : i32
    %c0_i32_1 = arith.constant 0 : i32
    return %c0_i32, %c0_i32_0 : i32, i32
  }
  func.func @transform_3(%arg0: i32, %arg1: i32) -> (i32, i32) {
    %c0_i32 = arith.constant 0 : i32
    %c0_i32_0 = arith.constant 0 : i32
    %c0_i32_1 = arith.constant 0 : i32
    return %c0_i32, %c0_i32_0 : i32, i32
  }
  func.func @transform_4(%arg0: i32, %arg1: i32) -> (i32, i32) {
    %c0_i32 = arith.constant 0 : i32
    %c0_i32_0 = arith.constant 0 : i32
    %c0_i32_1 = arith.constant 0 : i32
    return %c0_i32, %c0_i32_0 : i32, i32
  }
  func.func @transform_5(%arg0: i32, %arg1: i32) -> (i32, i32) {
    %c0_i32 = arith.constant 0 : i32
    %c0_i32_0 = arith.constant 0 : i32
    %c0_i32_1 = arith.constant 0 : i32
    return %c0_i32, %c0_i32_0 : i32, i32
  }
  func.func @transform_6(%arg0: i32, %arg1: i32) -> (i32, i32, i32) {
    %c0_i32 = arith.constant 0 : i32
    %c0_i32_0 = arith.constant 0 : i32
    return %arg0, %arg1, %c0_i32 : i32, i32, i32
  }
}

</mosaic_0001>

<bundles_post_ra>
// kernel: tpu_custom_call.1
= control target key start
LH: loop header
LB: loop body
LE: loop exit
PB: predicated region body
PF: predicated region fallthrough
CT: control target
= control target key end

     0   :  { %vm123_vm0 = vcmask 1041408   ;;  %vm98_vm1 = vcmask 31744   ;;  %v2035_v4 = vmov 0.0   ;;  %vm29_vm2 = vcmask 261120   ;;  %s2036_s14 = smov 32   ;;  %s2462_s0 = inlined_call_operand.vmem [shape: bf16[1,128,4], index: 0, kind: input, shape index: {}]   ;;  %s2463_s1 = inlined_call_operand.vmem [shape: bf16[4,128], index: 1, kind: input, shape index: {}]   ;;  %s2464_s2 = inlined_call_operand.vmem [shape: bf16[32,128], index: 2, kind: input, shape index: {}]   ;;  %s2465_s3 = inlined_call_operand.vmem [shape: f32[1,128], index: 3, kind: input, shape index: {}]   ;;  %s2466_s4 = inlined_call_operand.vmem [shape: bf16[32,128], index: 4, kind: input, shape index: {}]   ;;  %s2467_s5 = inlined_call_operand.vmem [shape: f32[1,128], index: 5, kind: input, shape index: {}]   ;;  %s2468_s6 = inlined_call_operand.hbm [shape: f32[1,128,128], index: 6, kind: output, shape index: {}]  }
   0x1   :  { %v50_v0 = vld [vmem:[%s2463_s1] sm:$0x3]  ;;  %v1857_v3 = vld [vmem:[%s2462_s0 + $0x28] sm:$0xff]   ;;  %v1859_v6 = vld [vmem:[%s2462_s0 + $0x30] sm:$0xff]   ;;  %30 = vst.msk [vmem:[#allocation4] sm:$0xff] %vm29_vm2, %v2035_v4  ;;  %vm2037_vm3 = vmmov 0  }
   0x2   :  { %v1856_v1 = vld [vmem:[%s2462_s0 + $0x20] sm:$0xff]   ;;  %1847 = vmatprep.subr.msk.bf16.mxu1 %vm123_vm0, %v50_v0  ;;  %v125_v2 = vsel %vm123_vm0, %v50_v0, 0  ;;  %1846 = vmatprep.subr.msk.bf16.mxu0 %vm123_vm0, %v50_v0  ;;  %31 = vst.msk [vmem:[#allocation4 + $0x8] sm:$0xff] %vm29_vm2, %v2035_v4  ;;  %32 = vst.msk [vmem:[#allocation5] sm:$0xff] %vm29_vm2, %v2035_v4  ;;  %v1861_v7 = vld [vmem:[%s2464_s2 + $0x8] sm:$0xff]  }
   0x3   :  { %1845 = vmatpush3.bf16.msra.mxu1 %v125_v2  ;;  %1752 = vmatprep.mubr.msk.bf16.mxu1 %vm98_vm1, %v1856_v1  ;;  %v1858_v5 = vld [vmem:[%s2464_s2] sm:$0xff]   ;;  %33 = vst.msk [vmem:[#allocation5 + $0x8] sm:$0xff] %vm29_vm2, %v2035_v4  ;;  %v1860_v9 = vld [vmem:[%s2462_s0 + $0x38] sm:$0xff]   ;;  %v1863_v10 = vld [vmem:[%s2462_s0 + $0x8] sm:$0xff]  }
   0x4   :  { %1760 = vmatprep.subr.bf16.mxu1 %v2035_v4  ;;  %1743 = vmatpush3.bf16.msra.mxu0 %v125_v2  ;;  %v1862_v8 = vld [vmem:[%s2462_s0] sm:$0xff]  }
   0x5   :  { %1792 = vmatprep.subr.bf16.mxu0 %v2035_v4  ;;  %1744 = vmatprep.mubr.msk.bf16.mxu0 %vm98_vm1, %v1862_v8 }
   0x6   :  { %1753 = vmatmul.mubr.msk.bf16.vlgmr.msra.gmra.mrb[0].mxu1 %vm98_vm1, %v1857_v3 }
   0x7   :  { %1761 = vmatpush3.bf16.msra.mxu1 %v1858_v5  ;;  %1756 = vmatprep.mubr.msk.bf16.mxu1 %vm98_vm1, %v1859_v6 }
   0x8   :  { %1762 = vmatprep.subr.bf16.mxu1 %v2035_v4  ;;  %1745 = vmatmul.mubr.msk.bf16.vlgmr.msra.gmra.mrb[0].mxu0 %vm98_vm1, %v1863_v10  ;;  %v242_v11 = vld [vmem:[#allocation4] sm:$0xff] }
   0x9   :  { %v243_v12 = vld [vmem:[#allocation4 + $0x8] sm:$0xff]  ;;  %v322_v13 = vld [vmem:[#allocation5] sm:$0xff] }
   0xa   :  { %326 = vrot.lane.b32.xlu1 %v322_v13, %s2036_s14  ;;  %v323_v14 = vld [vmem:[#allocation5 + $0x8] sm:$0xff]  ;;  %v244_v15 = vpack.c.bf16 %v243_v12, %v242_v11 }
   0xb   :  { %1763 = vmatpush3.bf16.msra.mxu1 %v1861_v7 }
   0xc   :  { %1768 = vmatprep.subr.bf16.mxu1 %v2035_v4 }
   0xe   :  { %1757 = vmatmul.mubr.msk.bf16.gmra.mrb[4].mxu1 %vm98_vm1, %v1860_v9  ;;  %328 = vrot.lane.b32.xlu1 %v323_v14, %s2036_s14 }
   0xf   :  { %1764 = vmatprep.mubr.msk.bf16.mxu1 %vm2037_vm3, %v2035_v4 }
  0x16   :  { %1765 = vmatmul.mubr.msk.bf16.vlgmr.msra.gmra.mrb[8].mxu1 %vm29_vm2, %v244_v15 }
  0x17   :  { %1772 = vmatprep.mubr.msk.bf16.mxu1 %vm2037_vm3, %v2035_v4 }
  0x18   :  { %11 = vsyncpa [#allocation7], 0  ;;  %v2153_v28 = vld [vmem:[%s2465_s3] ss:$0 sm:$0xff]  ;;  %s2038_s17 = smov 64   ;;  %v1865_v62 = vld [vmem:[%s2464_s2 + $0x8] sm:$0xff]  }
  0x19   :  { %v1864_v61 = vld [vmem:[%s2464_s2] sm:$0xff]   ;;  %s2039_s22 = smov 96  }
  0x1a   :  { %1769 = vmatpush3.bf16.msra.mxu1 %v1864_v61 }
  0x1b   :  { %1770 = vmatprep.subr.bf16.mxu1 %v2035_v4 }
  0x1e   :  { %1771 = vmatpush3.bf16.msra.mxu1 %v1865_v62 }
  0x1f   :  { %1776 = vmatprep.subr.bf16.mxu1 %v2035_v4 }
  0x7c   :  { %v327_v51 = vpop.permute.xlu1 %326 }
  0x80   :  { %v329_v53 = vpop.permute.xlu1 %328 }
  0xd9   :  { %v2130_v16 = vpop.f32.mrb[0].mxu1 }
  0xda   :  { %v2132_v17 = vpop.f32.mrb[1].mxu1 }
  0xdb   :  { %v2134_v18 = vpop.f32.mrb[2].mxu1  ;;  %v2138_v20 = vpop.f32.mrb[0].mxu0 }
  0xdc   :  { %v2136_v19 = vpop.f32.mrb[3].mxu1  ;;  %v161_v21 = vpop.f32.mrb[1].mxu0  ;;  %v170_v11 = vadd.f32 %v2138_v20, %v2153_v28 }
  0xdd   :  { %v2140_v22 = vpop.f32.mrb[2].mxu0  ;;  %v162_v29 = vadd.f32 %v2153_v28, %v161_v21 }
  0xde   :  { %v164_v24 = vpop.f32.mrb[3].mxu0  ;;  %v173_v13 = vadd.f32 %v2140_v22, %v2153_v28 }
  0xdf   :  { %v165_v31 = vadd.f32 %v2153_v28, %v164_v24 }
  0xe1   :  { %v2142_v23 = vpop.f32.mrb[4].mxu1 }
  0xe2   :  { %v2144_v25 = vpop.f32.mrb[5].mxu1 }
  0xe3   :  { %v2146_v26 = vpop.f32.mrb[6].mxu1 }
  0xe4   :  { %v2148_v27 = vpop.f32.mrb[7].mxu1 }
  0xe9   :  { %v299_v30 = vpop.f32.mrb[8].mxu1 }
  0xea   :  { %v306_v32 = vadd.f32 %v299_v30, %v162_v29  ;;  %v1766_v33 = vpop.f32.mrb[9].mxu1 }
  0xeb   :  { %v302_v34 = vpop.f32.mrb[10].mxu1 }
  0xec   :  { %1882 = vtanh.f32 %v306_v32  ;;  %v307_v35 = vadd.f32 %v302_v34, %v165_v31  ;;  %v1767_v36 = vpop.f32.mrb[11].mxu1  ;;  %v1651_v39 = vmul.f32 -1.442695, %v306_v32 }
  0xee   :  { %1884 = vtanh.f32 %v307_v35  ;;  %v1652_v40 = vmul.f32 -1.442695, %v307_v35 }
  0xef   :  { %1886 = vpow2.f32 %v1651_v39 }
  0xf0   :  { %1888 = vpow2.f32 %v1652_v40 }
  0xf6   :  { %v1883_v37 = vpop.eup %1882 }
  0xf7   :  { %336 = vrot.lane.b32.xlu0 %v1883_v37, %s2038_s17 }
  0xf8   :  { %v1885_v38 = vpop.eup %1884 }
  0xf9   :  { %v1887_v41 = vpop.eup %1886 }
  0xfa   :  { %v314_v42 = vadd.f32 1.0, %v1887_v41  ;;  %v1889_v43 = vpop.eup %1888 }
  0xfb   :  { %338 = vrot.lane.b32.xlu0 %v1885_v38, %s2038_s17  ;;  %v315_v44 = vadd.f32 1.0, %v1889_v43 }
  0xfc   :  { %1890 = vrcp.f32 %v314_v42 }
  0xfd   :  { %1892 = vrcp.f32 %v315_v44 }
 0x106   :  { %v1891_v45 = vpop.eup %1890 }
 0x107   :  { %v1893_v48 = vpop.eup %1892  ;;  %v332_v52 = vmul.f32 %v1891_v45, %v327_v51 }
 0x108   :  { %v333_v56 = vmul.f32 %v1893_v48, %v329_v53 }
 0x169   :  { %v337_v46 = vpop.permute.xlu0 %336 }
 0x16a   :  { %v342_v47 = vmul.f32 %v1891_v45, %v337_v46 }
 0x16c   :  { %346 = vrot.lane.b32.xlu0 %v342_v47, %s2036_s14 }
 0x16d   :  { %v339_v49 = vpop.permute.xlu0 %338 }
 0x16e   :  { %v343_v50 = vmul.f32 %v1893_v48, %v339_v49 }
 0x170   :  { %348 = vrot.lane.b32.xlu1 %v343_v50, %s2036_s14 }
 0x1de   :  { %v347_v54 = vpop.permute.xlu0 %346 }
 0x1df   :  { %v352_v55 = vadd.f32 %v347_v54, %v332_v52  ;;  %v1866_v54 = vld [vmem:[%s2464_s2] sm:$0xff]  }
 0x1e1   :  { %1894 = vtanh.f32 %v352_v55 }
 0x1e2   :  { %v349_v57 = vpop.permute.xlu1 %348 }
 0x1e3   :  { %v353_v58 = vadd.f32 %v349_v57, %v333_v56  ;;  %v1868_v56 = vld [vmem:[%s2462_s0 + $0x18] sm:$0xff]   ;;  %v1869_v57 = vld [vmem:[%s2464_s2 + $0x8] sm:$0xff]  }
 0x1e5   :  { %1896 = vtanh.f32 %v353_v58 }
 0x1eb   :  { %v1895_v59 = vpop.eup %1894 }
 0x1ec   :  { %358 = vrot.lane.b32.xlu0 %v1895_v59, %s2038_s17 }
 0x1ef   :  { %v1897_v60 = vpop.eup %1896 }
 0x1f0   :  { %360 = vrot.lane.b32.xlu1 %v1897_v60, %s2038_s17 }
 0x25e   :  { %v359_v63 = vpop.permute.xlu0 %358 }
 0x25f   :  { %v364_v0 = vmul.f32 %v1891_v45, %v359_v63 }
 0x261   :  { %378 = vrot.lane.b32.xlu0 %v364_v0, %s2036_s14 }
 0x262   :  { %v361_v1 = vpop.permute.xlu1 %360 }
 0x263   :  { %v365_v2 = vmul.f32 %v1893_v48, %v361_v1 }
 0x265   :  { %368 = vrot.lane.b32.xlu0 %v352_v55, %s2039_s22  ;;  %380 = vrot.lane.b32.xlu1 %v365_v2, %s2036_s14  ;;  %v1867_v55 = vld [vmem:[%s2462_s0 + $0x10] sm:$0xff]  }
 0x266   :  { %1748 = vmatprep.mubr.msk.bf16.mxu0 %vm98_vm1, %v1867_v55 }
 0x267   :  { %1749 = vmatmul.mubr.msk.bf16.gmra.mrb[4].mxu0 %vm98_vm1, %v1868_v56 }
 0x268   :  { %1796 = vmatprep.mubr.msk.bf16.mxu0 %vm2037_vm3, %v2035_v4 }
 0x269   :  { %370 = vrot.lane.b32.xlu1 %v353_v58, %s2039_s22 }
 0x2d3   :  { %v379_v3 = vpop.permute.xlu0 %378 }
 0x2d4   :  { %384 = vst.msk [vmem:[#allocation4] sm:$0xff] %vm29_vm2, %v379_v3  ;;  %386 = vst.msk [vmem:[#allocation3] sm:$0xff] %vm29_vm2, %v379_v3 }
 0x2d7   :  { %v369_v5 = vpop.permute.xlu0 %368  ;;  %v381_v6 = vpop.permute.xlu1 %380 }
 0x2d8   :  { %374 = vst.msk [vmem:[#allocation5] sm:$0xff] %vm29_vm2, %v369_v5  ;;  %385 = vst.msk [vmem:[#allocation4 + $0x8] sm:$0xff] %vm29_vm2, %v381_v6 }
 0x2d9   :  { %387 = vst.msk [vmem:[#allocation3 + $0x8] sm:$0xff] %vm29_vm2, %v381_v6 }
 0x2db   :  { %v371_v7 = vpop.permute.xlu1 %370  ;;  %v391_v8 = vld [vmem:[#allocation4] sm:$0xff] }
 0x2dc   :  { %375 = vst.msk [vmem:[#allocation5 + $0x8] sm:$0xff] %vm29_vm2, %v371_v7 }
 0x2df   :  { %v392_v9 = vld [vmem:[#allocation4 + $0x8] sm:$0xff]  ;;  %v470_v32 = vld [vmem:[#allocation5] sm:$0xff] }
 0x2e0   :  { %v393_v10 = vpack.c.bf16 %v392_v9, %v391_v8 }
 0x2e2   :  { %1773 = vmatmul.mubr.msk.bf16.vlgmr.msra.gmra.mrb[12].mxu1 %vm29_vm2, %v393_v10 }
 0x2e3   :  { %1780 = vmatprep.mubr.msk.bf16.mxu1 %vm2037_vm3, %v2035_v4  ;;  %v471_v20 = vld [vmem:[#allocation5 + $0x8] sm:$0xff]  ;;  %1777 = vmatpush3.bf16.msra.mxu1 %v1866_v54  ;;  %v1871_v54 = vld [vmem:[%s2464_s2 + $0x8] sm:$0xff]  }
 0x2e4   :  { %1778 = vmatprep.subr.bf16.mxu1 %v2035_v4 }
 0x2e7   :  { %1779 = vmatpush3.bf16.msra.mxu1 %v1869_v57 }
 0x2e8   :  { %1784 = vmatprep.subr.bf16.mxu1 %v2035_v4 }
 0x33a   :  { %v2227_v6 = vpop.f32.mrb[4].mxu0 }
 0x33b   :  { %v177_v7 = vpop.f32.mrb[5].mxu0 }
 0x33c   :  { %v2229_v8 = vpop.f32.mrb[6].mxu0  ;;  %v178_v10 = vadd.f32 %v2153_v28, %v177_v7 }
 0x33d   :  { %v180_v9 = vpop.f32.mrb[7].mxu0 }
 0x3b5   :  { %v447_v12 = vpop.f32.mrb[12].mxu1 }
 0x3b6   :  { %v454_v14 = vadd.f32 %v447_v12, %v170_v11  ;;  %v1774_v15 = vpop.f32.mrb[13].mxu1  ;;  %v181_v12 = vadd.f32 %v2153_v28, %v180_v9 }
 0x3b7   :  { %v450_v21 = vpop.f32.mrb[14].mxu1 }
 0x3b8   :  { %1898 = vtanh.f32 %v454_v14  ;;  %v455_v24 = vadd.f32 %v450_v21, %v173_v13  ;;  %v1775_v29 = vpop.f32.mrb[15].mxu1  ;;  %v1656_v22 = vmul.f32 -1.442695, %v454_v14 }
 0x3ba   :  { %1900 = vtanh.f32 %v455_v24  ;;  %v1657_v33 = vmul.f32 -1.442695, %v455_v24 }
 0x3bb   :  { %1902 = vpow2.f32 %v1656_v22 }
 0x3bc   :  { %1904 = vpow2.f32 %v1657_v33 }
 0x3c2   :  { %v1899_v30 = vpop.eup %1898 }
 0x3c3   :  { %484 = vrot.lane.b32.xlu0 %v1899_v30, %s2038_s17 }
 0x3c4   :  { %v1901_v31 = vpop.eup %1900 }
 0x3c5   :  { %486 = vrot.lane.b32.xlu1 %v1901_v31, %s2038_s17  ;;  %v1903_v34 = vpop.eup %1902 }
 0x3c6   :  { %v1905_v35 = vpop.eup %1904  ;;  %v462_v36 = vadd.f32 1.0, %v1903_v34 }
 0x3c7   :  { %474 = vrot.lane.b32.xlu0 %v470_v32, %s2036_s14  ;;  %v463_v37 = vadd.f32 1.0, %v1905_v35 }
 0x3c8   :  { %1906 = vrcp.f32 %v462_v36 }
 0x3c9   :  { %476 = vrot.lane.b32.xlu1 %v471_v20, %s2036_s14  ;;  %1908 = vrcp.f32 %v463_v37 }
 0x3d2   :  { %v1907_v38 = vpop.eup %1906 }
 0x3d3   :  { %v1909_v41 = vpop.eup %1908 }
 0x435   :  { %v485_v39 = vpop.permute.xlu0 %484 }
 0x436   :  { %v490_v40 = vmul.f32 %v1907_v38, %v485_v39 }
 0x437   :  { %v487_v42 = vpop.permute.xlu1 %486 }
 0x438   :  { %494 = vrot.lane.b32.xlu0 %v490_v40, %s2036_s14  ;;  %v491_v43 = vmul.f32 %v1909_v41, %v487_v42 }
 0x439   :  { %v475_v44 = vpop.permute.xlu0 %474 }
 0x43a   :  { %496 = vrot.lane.b32.xlu1 %v491_v43, %s2036_s14  ;;  %v480_v45 = vmul.f32 %v1907_v38, %v475_v44 }
 0x43b   :  { %v477_v46 = vpop.permute.xlu1 %476 }
 0x43c   :  { %v481_v49 = vmul.f32 %v1909_v41, %v477_v46 }
 0x4aa   :  { %v495_v47 = vpop.permute.xlu0 %494 }
 0x4ab   :  { %v500_v48 = vadd.f32 %v495_v47, %v480_v45 }
 0x4ac   :  { %v497_v50 = vpop.permute.xlu1 %496 }
 0x4ad   :  { %1910 = vtanh.f32 %v500_v48  ;;  %v501_v51 = vadd.f32 %v497_v50, %v481_v49 }
 0x4af   :  { %1912 = vtanh.f32 %v501_v51 }
 0x4b7   :  { %v1911_v52 = vpop.eup %1910 }
 0x4b8   :  { %506 = vrot.lane.b32.xlu0 %v1911_v52, %s2038_s17 }
 0x4b9   :  { %v1913_v53 = vpop.eup %1912 }
 0x4ba   :  { %508 = vrot.lane.b32.xlu1 %v1913_v53, %s2038_s17  ;;  %v1870_v53 = vld [vmem:[%s2464_s2] sm:$0xff]  }
 0x52a   :  { %v507_v58 = vpop.permute.xlu0 %506 }
 0x52b   :  { %v512_v59 = vmul.f32 %v1907_v38, %v507_v58 }
 0x52c   :  { %v509_v60 = vpop.permute.xlu1 %508 }
 0x52d   :  { %526 = vrot.lane.b32.xlu0 %v512_v59, %s2036_s14  ;;  %v513_v61 = vmul.f32 %v1909_v41, %v509_v60 }
 0x52f   :  { %528 = vrot.lane.b32.xlu1 %v513_v61, %s2036_s14 }
 0x531   :  { %516 = vrot.lane.b32.xlu0 %v500_v48, %s2039_s22 }
 0x533   :  { %518 = vrot.lane.b32.xlu1 %v501_v51, %s2039_s22 }
 0x59f   :  { %v527_v62 = vpop.permute.xlu0 %526 }
 0x5a0   :  { %532 = vst.msk [vmem:[#allocation4] sm:$0xff] %vm29_vm2, %v527_v62  ;;  %535 = vst.msk [vmem:[#allocation3 + $0x10] sm:$0xff] %vm29_vm2, %v527_v62 }
 0x5a1   :  { %v529_v63 = vpop.permute.xlu1 %528 }
 0x5a2   :  { %533 = vst.msk [vmem:[#allocation4 + $0x8] sm:$0xff] %vm29_vm2, %v529_v63  ;;  %536 = vst.msk [vmem:[#allocation3 + $0x18] sm:$0xff] %vm29_vm2, %v529_v63 }
 0x5a3   :  { %v517_v0 = vpop.permute.xlu0 %516 }
 0x5a4   :  { %522 = vst.msk [vmem:[#allocation5] sm:$0xff] %vm29_vm2, %v517_v0 }
 0x5a5   :  { %v519_v1 = vpop.permute.xlu1 %518 }
 0x5a6   :  { %523 = vst.msk [vmem:[#allocation5 + $0x8] sm:$0xff] %vm29_vm2, %v519_v1 }
 0x5a7   :  { %v540_v2 = vld [vmem:[#allocation4] sm:$0xff] }
 0x5a9   :  { %v541_v3 = vld [vmem:[#allocation4 + $0x8] sm:$0xff] }
 0x5aa   :  { %v542_v5 = vpack.c.bf16 %v541_v3, %v540_v2  ;;  %v186_v2 = vadd.f32 %v2227_v6, %v2153_v28 }
 0x5ab   :  { %v619_v31 = vld [vmem:[#allocation5] sm:$0xff] }
 0x5ac   :  { %1781 = vmatmul.mubr.msk.bf16.vlgmr.msra.gmra.mrb[16].mxu1 %vm29_vm2, %v542_v5  ;;  %v189_v5 = vadd.f32 %v2229_v8, %v2153_v28 }
 0x5ad   :  { %1788 = vmatprep.mubr.msk.bf16.mxu1 %vm2037_vm3, %v2035_v4  ;;  %v620_v32 = vld [vmem:[#allocation5 + $0x8] sm:$0xff]  ;;  %1785 = vmatpush3.bf16.msra.mxu1 %v1870_v53 }
 0x5ae   :  { %1786 = vmatprep.subr.bf16.mxu1 %v2035_v4 }
 0x5b1   :  { %1787 = vmatpush3.bf16.msra.mxu1 %v1871_v54 }
 0x5b2   :  { %1800 = vmatprep.subr.bf16.mxu1 %v2035_v4 }
 0x67f   :  { %v596_v11 = vpop.f32.mrb[16].mxu1 }
 0x680   :  { %v603_v13 = vadd.f32 %v596_v11, %v178_v10  ;;  %v1782_v14 = vpop.f32.mrb[17].mxu1 }
 0x681   :  { %v599_v15 = vpop.f32.mrb[18].mxu1 }
 0x682   :  { %1914 = vtanh.f32 %v603_v13  ;;  %v604_v21 = vadd.f32 %v599_v15, %v181_v12  ;;  %v1783_v24 = vpop.f32.mrb[19].mxu1  ;;  %v1661_v20 = vmul.f32 -1.442695, %v603_v13 }
 0x684   :  { %1916 = vtanh.f32 %v604_v21  ;;  %v1662_v22 = vmul.f32 -1.442695, %v604_v21 }
 0x685   :  { %1918 = vpow2.f32 %v1661_v20 }
 0x686   :  { %1920 = vpow2.f32 %v1662_v22 }
 0x68c   :  { %v1915_v29 = vpop.eup %1914 }
 0x68d   :  { %633 = vrot.lane.b32.xlu0 %v1915_v29, %s2038_s17 }
 0x68e   :  { %v1917_v30 = vpop.eup %1916 }
 0x68f   :  { %635 = vrot.lane.b32.xlu1 %v1917_v30, %s2038_s17  ;;  %v1919_v33 = vpop.eup %1918 }
 0x690   :  { %v1921_v34 = vpop.eup %1920  ;;  %v611_v35 = vadd.f32 1.0, %v1919_v33 }
 0x691   :  { %623 = vrot.lane.b32.xlu0 %v619_v31, %s2036_s14  ;;  %v612_v36 = vadd.f32 1.0, %v1921_v34 }
 0x692   :  { %1922 = vrcp.f32 %v611_v35 }
 0x693   :  { %625 = vrot.lane.b32.xlu1 %v620_v32, %s2036_s14  ;;  %1924 = vrcp.f32 %v612_v36 }
 0x69c   :  { %v1923_v37 = vpop.eup %1922 }
 0x69d   :  { %v1925_v40 = vpop.eup %1924 }
 0x6ff   :  { %v634_v38 = vpop.permute.xlu0 %633 }
 0x700   :  { %v639_v39 = vmul.f32 %v1923_v37, %v634_v38 }
 0x701   :  { %v636_v41 = vpop.permute.xlu1 %635 }
 0x702   :  { %643 = vrot.lane.b32.xlu0 %v639_v39, %s2036_s14  ;;  %v640_v42 = vmul.f32 %v1925_v40, %v636_v41 }
 0x703   :  { %v624_v43 = vpop.permute.xlu0 %623 }
 0x704   :  { %645 = vrot.lane.b32.xlu1 %v640_v42, %s2036_s14  ;;  %v629_v44 = vmul.f32 %v1923_v37, %v624_v43 }
 0x705   :  { %v626_v45 = vpop.permute.xlu1 %625 }
 0x706   :  { %v630_v48 = vmul.f32 %v1925_v40, %v626_v45 }
 0x774   :  { %v644_v46 = vpop.permute.xlu0 %643 }
 0x775   :  { %v649_v47 = vadd.f32 %v644_v46, %v629_v44  ;;  %v1872_v44 = vld [vmem:[%s2464_s2] sm:$0xff]  }
 0x776   :  { %v646_v49 = vpop.permute.xlu1 %645  ;;  %1793 = vmatpush3.bf16.msra.mxu0 %v1872_v44 }
 0x777   :  { %1926 = vtanh.f32 %v649_v47  ;;  %v650_v50 = vadd.f32 %v646_v49, %v630_v48  ;;  %1794 = vmatprep.subr.bf16.mxu0 %v2035_v4 }
 0x779   :  { %1928 = vtanh.f32 %v650_v50 }
 0x781   :  { %v1927_v51 = vpop.eup %1926 }
 0x782   :  { %655 = vrot.lane.b32.xlu0 %v1927_v51, %s2038_s17 }
 0x783   :  { %v1929_v52 = vpop.eup %1928 }
 0x784   :  { %657 = vrot.lane.b32.xlu1 %v1929_v52, %s2038_s17 }
 0x7f4   :  { %v656_v55 = vpop.permute.xlu0 %655 }
 0x7f5   :  { %v661_v56 = vmul.f32 %v1923_v37, %v656_v55 }
 0x7f6   :  { %v658_v57 = vpop.permute.xlu1 %657 }
 0x7f7   :  { %675 = vrot.lane.b32.xlu0 %v661_v56, %s2036_s14  ;;  %v662_v58 = vmul.f32 %v1925_v40, %v658_v57 }
 0x7f9   :  { %677 = vrot.lane.b32.xlu1 %v662_v58, %s2036_s14 }
 0x7fb   :  { %665 = vrot.lane.b32.xlu0 %v649_v47, %s2039_s22  ;;  %v1873_v47 = vld [vmem:[%s2464_s2 + $0x8] sm:$0xff]  }
 0x7fc   :  { %1795 = vmatpush3.bf16.msra.mxu0 %v1873_v47 }
 0x7fd   :  { %667 = vrot.lane.b32.xlu1 %v650_v50, %s2039_s22  ;;  %1808 = vmatprep.subr.bf16.mxu0 %v2035_v4 }
 0x869   :  { %v676_v59 = vpop.permute.xlu0 %675 }
 0x86a   :  { %681 = vst.msk [vmem:[#allocation4] sm:$0xff] %vm29_vm2, %v676_v59  ;;  %684 = vst.msk [vmem:[#allocation3 + $0x20] sm:$0xff] %vm29_vm2, %v676_v59  ;;  %v194_v59 = vadd.f32 %v2153_v28, %v2132_v17 }
 0x86b   :  { %v678_v60 = vpop.permute.xlu1 %677 }
 0x86c   :  { %682 = vst.msk [vmem:[#allocation4 + $0x8] sm:$0xff] %vm29_vm2, %v678_v60  ;;  %685 = vst.msk [vmem:[#allocation3 + $0x28] sm:$0xff] %vm29_vm2, %v678_v60 }
 0x86d   :  { %v666_v61 = vpop.permute.xlu0 %665 }
 0x86e   :  { %671 = vst.msk [vmem:[#allocation5] sm:$0xff] %vm29_vm2, %v666_v61  ;;  %v197_v61 = vadd.f32 %v2153_v28, %v2136_v19 }
 0x86f   :  { %v668_v62 = vpop.permute.xlu1 %667 }
 0x870   :  { %672 = vst.msk [vmem:[#allocation5 + $0x8] sm:$0xff] %vm29_vm2, %v668_v62 }
 0x871   :  { %v689_v63 = vld [vmem:[#allocation4] sm:$0xff] }
 0x873   :  { %v690_v0 = vld [vmem:[#allocation4 + $0x8] sm:$0xff] }
 0x874   :  { %v691_v1 = vpack.c.bf16 %v690_v0, %v689_v63 }
 0x875   :  { %v768_v15 = vld [vmem:[#allocation5] sm:$0xff] }
 0x876   :  { %1789 = vmatmul.mubr.msk.bf16.vlgmr.msra.gmra.mrb[20].mxu1 %vm29_vm2, %v691_v1 }
 0x877   :  { %1804 = vmatprep.mubr.msk.bf16.mxu1 %vm2037_vm3, %v2035_v4  ;;  %v769_v6 = vld [vmem:[#allocation5 + $0x8] sm:$0xff] }
 0x949   :  { %v745_v3 = vpop.f32.mrb[20].mxu1 }
 0x94a   :  { %v752_v7 = vadd.f32 %v745_v3, %v186_v2  ;;  %v1790_v9 = vpop.f32.mrb[21].mxu1 }
 0x94b   :  { %v748_v10 = vpop.f32.mrb[22].mxu1 }
 0x94c   :  { %1930 = vtanh.f32 %v752_v7  ;;  %v753_v11 = vadd.f32 %v748_v10, %v189_v5  ;;  %v1791_v12 = vpop.f32.mrb[23].mxu1  ;;  %v1666_v8 = vmul.f32 -1.442695, %v752_v7 }
 0x94e   :  { %1932 = vtanh.f32 %v753_v11  ;;  %v1667_v21 = vmul.f32 -1.442695, %v753_v11 }
 0x94f   :  { %1934 = vpow2.f32 %v1666_v8 }
 0x950   :  { %1936 = vpow2.f32 %v1667_v21 }
 0x956   :  { %v1931_v13 = vpop.eup %1930 }
 0x957   :  { %782 = vrot.lane.b32.xlu0 %v1931_v13, %s2038_s17 }
 0x958   :  { %v1933_v14 = vpop.eup %1932 }
 0x959   :  { %784 = vrot.lane.b32.xlu1 %v1933_v14, %s2038_s17  ;;  %v1935_v24 = vpop.eup %1934 }
 0x95a   :  { %v1937_v29 = vpop.eup %1936  ;;  %v760_v30 = vadd.f32 1.0, %v1935_v24 }
 0x95b   :  { %772 = vrot.lane.b32.xlu0 %v768_v15, %s2036_s14  ;;  %v761_v31 = vadd.f32 1.0, %v1937_v29 }
 0x95c   :  { %1938 = vrcp.f32 %v760_v30 }
 0x95d   :  { %774 = vrot.lane.b32.xlu1 %v769_v6, %s2036_s14  ;;  %1940 = vrcp.f32 %v761_v31 }
 0x966   :  { %v1939_v32 = vpop.eup %1938 }
 0x967   :  { %v1941_v33 = vpop.eup %1940 }
 0x9c9   :  { %v783_v20 = vpop.permute.xlu0 %782 }
 0x9ca   :  { %v788_v22 = vmul.f32 %v1939_v32, %v783_v20 }
 0x9cb   :  { %v785_v34 = vpop.permute.xlu1 %784 }
 0x9cc   :  { %792 = vrot.lane.b32.xlu0 %v788_v22, %s2036_s14  ;;  %v789_v35 = vmul.f32 %v1941_v33, %v785_v34 }
 0x9cd   :  { %v773_v36 = vpop.permute.xlu0 %772 }
 0x9ce   :  { %794 = vrot.lane.b32.xlu1 %v789_v35, %s2036_s14  ;;  %v778_v37 = vmul.f32 %v1939_v32, %v773_v36 }
 0x9cf   :  { %v775_v38 = vpop.permute.xlu1 %774 }
 0x9d0   :  { %v779_v41 = vmul.f32 %v1941_v33, %v775_v38  ;;  %v1875_v38 = vld [vmem:[%s2464_s2 + $0x8] sm:$0xff]  }
 0xa3e   :  { %v793_v39 = vpop.permute.xlu0 %792 }
 0xa3f   :  { %v798_v40 = vadd.f32 %v793_v39, %v778_v37  ;;  %v1874_v37 = vld [vmem:[%s2464_s2] sm:$0xff]  }
 0xa40   :  { %v795_v42 = vpop.permute.xlu1 %794  ;;  %1801 = vmatpush3.bf16.msra.mxu1 %v1874_v37  ;;  %v1432_v37 = vld [vmem:[#allocation3 + $0x8] sm:$0xff] }
 0xa41   :  { %1942 = vtanh.f32 %v798_v40  ;;  %v799_v43 = vadd.f32 %v795_v42, %v779_v41  ;;  %1802 = vmatprep.subr.bf16.mxu1 %v2035_v4 }
 0xa43   :  { %1944 = vtanh.f32 %v799_v43 }
 0xa44   :  { %1803 = vmatpush3.bf16.msra.mxu1 %v1875_v38 }
 0xa45   :  { %1816 = vmatprep.subr.bf16.mxu1 %v2035_v4 }
 0xa4b   :  { %v1943_v45 = vpop.eup %1942 }
 0xa4c   :  { %804 = vrot.lane.b32.xlu0 %v1943_v45, %s2038_s17 }
 0xa4d   :  { %v1945_v46 = vpop.eup %1944 }
 0xa4e   :  { %806 = vrot.lane.b32.xlu1 %v1945_v46, %s2038_s17 }
 0xabe   :  { %v805_v48 = vpop.permute.xlu0 %804 }
 0xabf   :  { %v810_v49 = vmul.f32 %v1939_v32, %v805_v48 }
 0xac0   :  { %v807_v50 = vpop.permute.xlu1 %806 }
 0xac1   :  { %824 = vrot.lane.b32.xlu0 %v810_v49, %s2036_s14  ;;  %v811_v51 = vmul.f32 %v1941_v33, %v807_v50  ;;  %v202_v50 = vadd.f32 %v2130_v16, %v2153_v28 }
 0xac3   :  { %826 = vrot.lane.b32.xlu1 %v811_v51, %s2036_s14 }
 0xac5   :  { %814 = vrot.lane.b32.xlu0 %v798_v40, %s2039_s22 }
 0xac7   :  { %816 = vrot.lane.b32.xlu1 %v799_v43, %s2039_s22 }
 0xb33   :  { %v825_v52 = vpop.permute.xlu0 %824 }
 0xb34   :  { %830 = vst.msk [vmem:[#allocation4] sm:$0xff] %vm29_vm2, %v825_v52  ;;  %833 = vst.msk [vmem:[#allocation3 + $0x30] sm:$0xff] %vm29_vm2, %v825_v52  ;;  %v205_v52 = vadd.f32 %v2134_v18, %v2153_v28 }
 0xb35   :  { %v827_v53 = vpop.permute.xlu1 %826 }
 0xb36   :  { %831 = vst.msk [vmem:[#allocation4 + $0x8] sm:$0xff] %vm29_vm2, %v827_v53  ;;  %834 = vst.msk [vmem:[#allocation3 + $0x38] sm:$0xff] %vm29_vm2, %v827_v53 }
 0xb37   :  { %v815_v54 = vpop.permute.xlu0 %814 }
 0xb38   :  { %820 = vst.msk [vmem:[#allocation5] sm:$0xff] %vm29_vm2, %v815_v54 }
 0xb39   :  { %v817_v55 = vpop.permute.xlu1 %816 }
 0xb3a   :  { %821 = vst.msk [vmem:[#allocation5 + $0x8] sm:$0xff] %vm29_vm2, %v817_v55 }
 0xb3b   :  { %v838_v56 = vld [vmem:[#allocation4] sm:$0xff] }
 0xb3d   :  { %v839_v57 = vld [vmem:[#allocation4 + $0x8] sm:$0xff] }
 0xb3e   :  { %v840_v58 = vpack.c.bf16 %v839_v57, %v838_v56 }
 0xb3f   :  { %v917_v7 = vld [vmem:[#allocation5] sm:$0xff] }
 0xb40   :  { %1797 = vmatmul.mubr.msk.bf16.vlgmr.msra.gmra.mrb[8].mxu0 %vm29_vm2, %v840_v58 }
 0xb41   :  { %1812 = vmatprep.mubr.msk.bf16.mxu0 %vm2037_vm3, %v2035_v4  ;;  %v918_v17 = vld [vmem:[#allocation5 + $0x8] sm:$0xff] }
 0xc13   :  { %v894_v60 = vpop.f32.mrb[8].mxu0 }
 0xc14   :  { %v901_v62 = vadd.f32 %v894_v60, %v194_v59  ;;  %v1798_v63 = vpop.f32.mrb[9].mxu0 }
 0xc15   :  { %v897_v0 = vpop.f32.mrb[10].mxu0 }
 0xc16   :  { %1946 = vtanh.f32 %v901_v62  ;;  %v902_v1 = vadd.f32 %v897_v0, %v197_v61  ;;  %v1799_v2 = vpop.f32.mrb[11].mxu0  ;;  %v1671_v19 = vmul.f32 -1.442695, %v901_v62 }
 0xc18   :  { %1948 = vtanh.f32 %v902_v1  ;;  %v1672_v9 = vmul.f32 -1.442695, %v902_v1 }
 0xc19   :  { %1950 = vpow2.f32 %v1671_v19 }
 0xc1a   :  { %1952 = vpow2.f32 %v1672_v9 }
 0xc20   :  { %v1947_v3 = vpop.eup %1946 }
 0xc21   :  { %931 = vrot.lane.b32.xlu0 %v1947_v3, %s2038_s17 }
 0xc22   :  { %v1949_v5 = vpop.eup %1948 }
 0xc23   :  { %933 = vrot.lane.b32.xlu1 %v1949_v5, %s2038_s17  ;;  %v1951_v10 = vpop.eup %1950 }
 0xc24   :  { %v1953_v11 = vpop.eup %1952  ;;  %v909_v12 = vadd.f32 1.0, %v1951_v10 }
 0xc25   :  { %921 = vrot.lane.b32.xlu0 %v917_v7, %s2036_s14  ;;  %v910_v13 = vadd.f32 1.0, %v1953_v11 }
 0xc26   :  { %1954 = vrcp.f32 %v909_v12 }
 0xc27   :  { %923 = vrot.lane.b32.xlu1 %v918_v17, %s2036_s14  ;;  %1956 = vrcp.f32 %v910_v13 }
 0xc30   :  { %v1955_v14 = vpop.eup %1954 }
 0xc31   :  { %v1957_v8 = vpop.eup %1956 }
 0xc93   :  { %v932_v15 = vpop.permute.xlu0 %931 }
 0xc94   :  { %v937_v6 = vmul.f32 %v1955_v14, %v932_v15 }
 0xc95   :  { %v934_v21 = vpop.permute.xlu1 %933 }
 0xc96   :  { %941 = vrot.lane.b32.xlu0 %v937_v6, %s2036_s14  ;;  %v938_v24 = vmul.f32 %v1957_v8, %v934_v21 }
 0xc97   :  { %v922_v29 = vpop.permute.xlu0 %921 }
 0xc98   :  { %943 = vrot.lane.b32.xlu1 %v938_v24, %s2036_s14  ;;  %v927_v30 = vmul.f32 %v1955_v14, %v922_v29  ;;  %v1876_v24 = vld [vmem:[%s2464_s2] sm:$0xff]   ;;  %v1877_v29 = vld [vmem:[%s2464_s2 + $0x8] sm:$0xff]  }
 0xc99   :  { %v924_v31 = vpop.permute.xlu1 %923  ;;  %1809 = vmatpush3.bf16.msra.mxu0 %v1876_v24 }
 0xc9a   :  { %v928_v22 = vmul.f32 %v1957_v8, %v924_v31  ;;  %1810 = vmatprep.subr.bf16.mxu0 %v2035_v4 }
 0xc9d   :  { %1811 = vmatpush3.bf16.msra.mxu0 %v1877_v29 }
 0xd08   :  { %v942_v32 = vpop.permute.xlu0 %941 }
 0xd09   :  { %v947_v20 = vadd.f32 %v942_v32, %v927_v30  ;;  %v1878_v32 = vld [vmem:[%s2466_s4] sm:$0xff]  }
 0xd0a   :  { %v944_v33 = vpop.permute.xlu1 %943  ;;  %1824 = vmatprep.subr.bf16.mxu0 %v1878_v32 }
 0xd0b   :  { %1958 = vtanh.f32 %v947_v20  ;;  %v948_v34 = vadd.f32 %v944_v33, %v928_v22 }
 0xd0d   :  { %1960 = vtanh.f32 %v948_v34 }
 0xd15   :  { %v1959_v35 = vpop.eup %1958 }
 0xd16   :  { %953 = vrot.lane.b32.xlu0 %v1959_v35, %s2038_s17 }
 0xd17   :  { %v1961_v36 = vpop.eup %1960 }
 0xd18   :  { %955 = vrot.lane.b32.xlu1 %v1961_v36, %s2038_s17 }
 0xd88   :  { %v954_v39 = vpop.permute.xlu0 %953 }
 0xd89   :  { %v959_v40 = vmul.f32 %v1955_v14, %v954_v39 }
 0xd8a   :  { %v956_v41 = vpop.permute.xlu1 %955 }
 0xd8b   :  { %973 = vrot.lane.b32.xlu0 %v959_v40, %s2036_s14  ;;  %v960_v42 = vmul.f32 %v1957_v8, %v956_v41  ;;  %v1431_v41 = vld [vmem:[#allocation3] sm:$0xff] }
 0xd8d   :  { %975 = vrot.lane.b32.xlu1 %v960_v42, %s2036_s14  ;;  %v1879_v42 = vld [vmem:[%s2466_s4 + $0x8] sm:$0xff]  }
 0xd8f   :  { %963 = vrot.lane.b32.xlu0 %v947_v20, %s2039_s22 }
 0xd91   :  { %965 = vrot.lane.b32.xlu1 %v948_v34, %s2039_s22 }
 0xdfd   :  { %v974_v43 = vpop.permute.xlu0 %973 }
 0xdfe   :  { %979 = vst.msk [vmem:[#allocation4] sm:$0xff] %vm29_vm2, %v974_v43  ;;  %982 = vst.msk [vmem:[#allocation3 + $0x40] sm:$0xff] %vm29_vm2, %v974_v43  ;;  %v1447_v43 = vpack.c.bf16 %v1432_v37, %v1431_v41 }
 0xdff   :  { %v976_v44 = vpop.permute.xlu1 %975 }
 0xe00   :  { %980 = vst.msk [vmem:[#allocation4 + $0x8] sm:$0xff] %vm29_vm2, %v976_v44  ;;  %983 = vst.msk [vmem:[#allocation3 + $0x48] sm:$0xff] %vm29_vm2, %v976_v44  ;;  %v1434_v44 = vld [vmem:[#allocation3 + $0x18] sm:$0xff] }
 0xe01   :  { %v964_v45 = vpop.permute.xlu0 %963 }
 0xe02   :  { %969 = vst.msk [vmem:[#allocation5] sm:$0xff] %vm29_vm2, %v964_v45  ;;  %v1436_v45 = vld [vmem:[#allocation3 + $0x28] sm:$0xff] }
 0xe03   :  { %v966_v46 = vpop.permute.xlu1 %965 }
 0xe04   :  { %970 = vst.msk [vmem:[#allocation5 + $0x8] sm:$0xff] %vm29_vm2, %v966_v46  ;;  %v1433_v46 = vld [vmem:[#allocation3 + $0x10] sm:$0xff] }
 0xe05   :  { %v987_v47 = vld [vmem:[#allocation4] sm:$0xff] }
 0xe07   :  { %v988_v48 = vld [vmem:[#allocation4 + $0x8] sm:$0xff] }
 0xe08   :  { %v989_v49 = vpack.c.bf16 %v988_v48, %v987_v47  ;;  %v1448_v47 = vpack.c.bf16 %v1434_v44, %v1433_v46  ;;  %v1435_v48 = vld [vmem:[#allocation3 + $0x20] sm:$0xff] }
 0xe09   :  { %v1066_v60 = vld [vmem:[#allocation5] sm:$0xff] }
 0xe0a   :  { %1805 = vmatmul.mubr.msk.bf16.vlgmr.msra.gmra.mrb[24].mxu1 %vm29_vm2, %v989_v49  ;;  %v1449_v49 = vpack.c.bf16 %v1436_v45, %v1435_v48 }
 0xe0b   :  { %1820 = vmatprep.mubr.msk.bf16.mxu1 %vm2037_vm3, %v2035_v4  ;;  %v1067_v16 = vld [vmem:[#allocation5 + $0x8] sm:$0xff] }
 0xedd   :  { %v1043_v51 = vpop.f32.mrb[24].mxu1 }
 0xede   :  { %v1050_v53 = vadd.f32 %v1043_v51, %v202_v50  ;;  %v1806_v54 = vpop.f32.mrb[25].mxu1  ;;  %v1438_v50 = vld [vmem:[#allocation3 + $0x38] sm:$0xff]  ;;  %v1440_v51 = vld [vmem:[#allocation3 + $0x48] sm:$0xff] }
 0xedf   :  { %v1046_v55 = vpop.f32.mrb[26].mxu1  ;;  %v1439_v54 = vld [vmem:[#allocation3 + $0x40] sm:$0xff] }
 0xee0   :  { %1962 = vtanh.f32 %v1050_v53  ;;  %v1051_v56 = vadd.f32 %v1046_v55, %v205_v52  ;;  %v1807_v57 = vpop.f32.mrb[27].mxu1  ;;  %v1676_v18 = vmul.f32 -1.442695, %v1050_v53  ;;  %v1437_v52 = vld [vmem:[#allocation3 + $0x30] sm:$0xff]  ;;  %v1451_v55 = vpack.c.bf16 %v1440_v51, %v1439_v54 }
 0xee1   :  { %v1450_v53 = vpack.c.bf16 %v1438_v50, %v1437_v52 }
 0xee2   :  { %1964 = vtanh.f32 %v1051_v56  ;;  %v1677_v61 = vmul.f32 -1.442695, %v1051_v56 }
 0xee3   :  { %1966 = vpow2.f32 %v1676_v18 }
 0xee4   :  { %1968 = vpow2.f32 %v1677_v61 }
 0xeea   :  { %v1963_v58 = vpop.eup %1962 }
 0xeeb   :  { %1080 = vrot.lane.b32.xlu0 %v1963_v58, %s2038_s17 }
 0xeec   :  { %v1965_v59 = vpop.eup %1964 }
 0xeed   :  { %1082 = vrot.lane.b32.xlu1 %v1965_v59, %s2038_s17  ;;  %v1967_v62 = vpop.eup %1966  ;;  %v210_v59 = vadd.f32 %v2153_v28, %v2144_v25  ;;  %v2382_v25 = vld [vmem:[%s2467_s5] ss:$0 sm:$0xff] }
 0xeee   :  { %v1969_v63 = vpop.eup %1968  ;;  %v1058_v0 = vadd.f32 1.0, %v1967_v62 }
 0xeef   :  { %1070 = vrot.lane.b32.xlu0 %v1066_v60, %s2036_s14  ;;  %v1059_v1 = vadd.f32 1.0, %v1969_v63 }
 0xef0   :  { %1970 = vrcp.f32 %v1058_v0 }
 0xef1   :  { %1072 = vrot.lane.b32.xlu1 %v1067_v16, %s2036_s14  ;;  %1972 = vrcp.f32 %v1059_v1  ;;  %v2375_v16 = vld [vmem:[%s2465_s3] ss:$0 sm:$0xff] }
 0xef2   :  { %v213_v18 = vadd.f32 %v2375_v16, %v2148_v27 }
 0xefa   :  { %v1971_v2 = vpop.eup %1970 }
 0xefb   :  { %v1973_v7 = vpop.eup %1972 }
 0xf5d   :  { %v1081_v3 = vpop.permute.xlu0 %1080 }
 0xf5e   :  { %v1086_v5 = vmul.f32 %v1971_v2, %v1081_v3 }
 0xf5f   :  { %v1083_v17 = vpop.permute.xlu1 %1082 }
 0xf60   :  { %1090 = vrot.lane.b32.xlu0 %v1086_v5, %s2036_s14  ;;  %v1087_v19 = vmul.f32 %v1973_v7, %v1083_v17 }
 0xf61   :  { %v1071_v9 = vpop.permute.xlu0 %1070 }
 0xf62   :  { %1092 = vrot.lane.b32.xlu1 %v1087_v19, %s2036_s14  ;;  %v1076_v10 = vmul.f32 %v1971_v2, %v1071_v9 }
 0xf63   :  { %v1073_v11 = vpop.permute.xlu1 %1072 }
 0xf64   :  { %v1077_v14 = vmul.f32 %v1973_v7, %v1073_v11 }
 0xfd2   :  { %v1091_v12 = vpop.permute.xlu0 %1090 }
 0xfd3   :  { %v1096_v13 = vadd.f32 %v1091_v12, %v1076_v10 }
 0xfd4   :  { %v1093_v15 = vpop.permute.xlu1 %1092 }
 0xfd5   :  { %1974 = vtanh.f32 %v1096_v13  ;;  %v1097_v6 = vadd.f32 %v1093_v15, %v1077_v14 }
 0xfd7   :  { %1976 = vtanh.f32 %v1097_v6 }
 0xfdf   :  { %v1975_v8 = vpop.eup %1974 }
 0xfe0   :  { %1102 = vrot.lane.b32.xlu0 %v1975_v8, %s2038_s17 }
 0xfe1   :  { %v1977_v21 = vpop.eup %1976 }
 0xfe2   :  { %1104 = vrot.lane.b32.xlu1 %v1977_v21, %s2038_s17 }
0x1052   :  { %v1103_v30 = vpop.permute.xlu0 %1102 }
0x1053   :  { %v1108_v31 = vmul.f32 %v1971_v2, %v1103_v30 }
0x1054   :  { %v1105_v20 = vpop.permute.xlu1 %1104 }
0x1055   :  { %1122 = vrot.lane.b32.xlu0 %v1108_v31, %s2036_s14  ;;  %v1109_v22 = vmul.f32 %v1973_v7, %v1105_v20 }
0x1057   :  { %1124 = vrot.lane.b32.xlu1 %v1109_v22, %s2036_s14 }
0x1059   :  { %1112 = vrot.lane.b32.xlu0 %v1096_v13, %s2039_s22 }
0x105b   :  { %1114 = vrot.lane.b32.xlu1 %v1097_v6, %s2039_s22 }
0x10c7   :  { %v1123_v33 = vpop.permute.xlu0 %1122 }
0x10c8   :  { %1128 = vst.msk [vmem:[#allocation4] sm:$0xff] %vm29_vm2, %v1123_v33  ;;  %1131 = vst.msk [vmem:[#allocation3 + $0x50] sm:$0xff] %vm29_vm2, %v1123_v33 }
0x10c9   :  { %v1125_v34 = vpop.permute.xlu1 %1124 }
0x10ca   :  { %1129 = vst.msk [vmem:[#allocation4 + $0x8] sm:$0xff] %vm29_vm2, %v1125_v34  ;;  %1132 = vst.msk [vmem:[#allocation3 + $0x58] sm:$0xff] %vm29_vm2, %v1125_v34 }
0x10cb   :  { %v1113_v35 = vpop.permute.xlu0 %1112 }
0x10cc   :  { %1118 = vst.msk [vmem:[#allocation5] sm:$0xff] %vm29_vm2, %v1113_v35 }
0x10cd   :  { %v1115_v36 = vpop.permute.xlu1 %1114 }
0x10ce   :  { %1119 = vst.msk [vmem:[#allocation5 + $0x8] sm:$0xff] %vm29_vm2, %v1115_v36 }
0x10cf   :  { %v1136_v38 = vld [vmem:[#allocation4] sm:$0xff]  ;;  %v1441_v57 = vld [vmem:[#allocation3 + $0x50] sm:$0xff] }
0x10d1   :  { %v1137_v39 = vld [vmem:[#allocation4 + $0x8] sm:$0xff]  ;;  %v1442_v56 = vld [vmem:[#allocation3 + $0x58] sm:$0xff] }
0x10d2   :  { %v1138_v40 = vpack.c.bf16 %v1137_v39, %v1136_v38  ;;  %v1452_v58 = vpack.c.bf16 %v1442_v56, %v1441_v57 }
0x10d3   :  { %v1215_v14 = vld [vmem:[#allocation5] sm:$0xff] }
0x10d4   :  { %1813 = vmatmul.mubr.msk.bf16.vlgmr.msra.gmra.mrb[12].mxu0 %vm29_vm2, %v1138_v40 }
0x10d5   :  { %1825 = vmatpush3.bf16.msra.mxu0 %v1878_v32  ;;  %1828 = vmatprep.mubr.msk.bf16.mxu0 %vm29_vm2, %v1447_v43  ;;  %v1216_v29 = vld [vmem:[#allocation5 + $0x8] sm:$0xff] }
0x10d6   :  { %1826 = vmatprep.subr.bf16.mxu0 %v1879_v42 }
0x10d9   :  { %1827 = vmatpush3.bf16.msra.mxu0 %v1879_v42 }
0x10dc   :  { %1829 = vmatmul.mubr.msk.bf16.vlgmr.msra.gmra.mrb[16].mxu0 %vm29_vm2, %v1448_v47 }
0x10dd   :  { %1832 = vmatprep.mubr.msk.bf16.mxu0 %vm29_vm2, %v1449_v49 }
0x10e4   :  { %1833 = vmatmul.mubr.msk.bf16.gmra.mrb[20].mxu0 %vm29_vm2, %v1450_v53 }
0x10e5   :  { %1836 = vmatprep.mubr.msk.bf16.mxu0 %vm29_vm2, %v1451_v55 }
0x10ec   :  { %1837 = vmatmul.mubr.msk.bf16.gmra.mrb[24].mxu0 %vm29_vm2, %v1452_v58  ;;  %v1880_v58 = vld [vmem:[%s2464_s2] sm:$0xff]  }
0x10ed   :  { %1817 = vmatpush3.bf16.msra.mxu1 %v1880_v58 }
0x10ee   :  { %1818 = vmatprep.subr.bf16.mxu1 %v2035_v4 }
0x11a7   :  { %v1192_v60 = vpop.f32.mrb[12].mxu0 }
0x11a8   :  { %v1199_v61 = vadd.f32 %v1192_v60, %v210_v59  ;;  %v1814_v62 = vpop.f32.mrb[13].mxu0  ;;  %v1881_v59 = vld [vmem:[%s2464_s2 + $0x8] sm:$0xff]   ;;  %s2040_s2 = smov [#allocation6]  }
0x11a9   :  { %v1195_v63 = vpop.f32.mrb[14].mxu0  ;;  %1819 = vmatpush3.bf16.msra.mxu1 %v1881_v59 }
0x11aa   :  { %1978 = vtanh.f32 %v1199_v61  ;;  %v1200_v0 = vadd.f32 %v1195_v63, %v213_v18  ;;  %v1815_v1 = vpop.f32.mrb[15].mxu0  ;;  %v1681_v36 = vmul.f32 -1.442695, %v1199_v61 }
0x11ac   :  { %1980 = vtanh.f32 %v1200_v0  ;;  %v1682_v37 = vmul.f32 -1.442695, %v1200_v0 }
0x11ad   :  { %1982 = vpow2.f32 %v1681_v36 }
0x11ae   :  { %1984 = vpow2.f32 %v1682_v37 }
0x11af   :  { %v1830_v28 = vpop.f32.mrb[16].mxu0 }
0x11b0   :  { %v1545_v2 = vadd.f32 %v1830_v28, %v2382_v25  ;;  %v1536_v3 = vpop.f32.mrb[17].mxu0 }
0x11b1   :  { %v1537_v5 = vadd.f32 %v2382_v25, %v1536_v3  ;;  %v1831_v7 = vpop.f32.mrb[18].mxu0 }
0x11b2   :  { %1601 = vst [vmem:[#allocation6 + $0x10] sm:$0xff] %v1545_v2  ;;  %v1548_v27 = vadd.f32 %v1831_v7, %v2382_v25  ;;  %v1539_v17 = vpop.f32.mrb[19].mxu0 }
0x11b3   :  { %1599 = vst [vmem:[#allocation6] sm:$0xff] %v1537_v5  ;;  %v1540_v19 = vadd.f32 %v2382_v25, %v1539_v17  ;;  %v218_v17 = vadd.f32 %v2375_v16, %v2142_v23 }
0x11b4   :  { %v1979_v9 = vpop.eup %1978  ;;  %1602 = vst [vmem:[#allocation6 + $0x18] sm:$0xff] %v1548_v27 }
0x11b5   :  { %1600 = vst [vmem:[#allocation6 + $0x8] sm:$0xff] %v1540_v19  ;;  %1229 = vrot.lane.b32.xlu0 %v1979_v9, %s2038_s17  ;;  %v221_v9 = vadd.f32 %v2375_v16, %v2146_v26 }
0x11b6   :  { %v1981_v10 = vpop.eup %1980 }
0x11b7   :  { %v1834_v11 = vpop.f32.mrb[20].mxu0  ;;  %1231 = vrot.lane.b32.xlu1 %v1981_v10, %s2038_s17  ;;  %v1983_v38 = vpop.eup %1982 }
0x11b8   :  { %v1561_v12 = vadd.f32 %v1834_v11, %v2382_v25  ;;  %v1552_v13 = vpop.f32.mrb[21].mxu0  ;;  %v1985_v39 = vpop.eup %1984  ;;  %v1207_v40 = vadd.f32 1.0, %v1983_v38 }
0x11b9   :  { %v1553_v15 = vadd.f32 %v2382_v25, %v1552_v13  ;;  %1219 = vrot.lane.b32.xlu0 %v1215_v14, %s2036_s14  ;;  %v1835_v6 = vpop.f32.mrb[22].mxu0  ;;  %v1208_v41 = vadd.f32 1.0, %v1985_v39 }
0x11ba   :  { %1605 = vst [vmem:[#allocation6 + $0x30] sm:$0xff] %v1561_v12  ;;  %v1564_v8 = vadd.f32 %v1835_v6, %v2382_v25  ;;  %v1555_v21 = vpop.f32.mrb[23].mxu0  ;;  %1986 = vrcp.f32 %v1207_v40 }
0x11bb   :  { %1603 = vst [vmem:[#allocation6 + $0x20] sm:$0xff] %v1553_v15  ;;  %v1556_v24 = vadd.f32 %v2382_v25, %v1555_v21  ;;  %1221 = vrot.lane.b32.xlu1 %v1216_v29, %s2036_s14  ;;  %1988 = vrcp.f32 %v1208_v41 }
0x11bc   :  { %1606 = vst [vmem:[#allocation6 + $0x38] sm:$0xff] %v1564_v8 }
0x11bd   :  { %1604 = vst [vmem:[#allocation6 + $0x28] sm:$0xff] %v1556_v24 }
0x11bf   :  { %v1838_v30 = vpop.f32.mrb[24].mxu0 }
0x11c0   :  { %v1577_v31 = vadd.f32 %v1838_v30, %v2382_v25  ;;  %v1568_v32 = vpop.f32.mrb[25].mxu0 }
0x11c1   :  { %v1569_v20 = vadd.f32 %v2382_v25, %v1568_v32  ;;  %v1839_v22 = vpop.f32.mrb[26].mxu0 }
0x11c2   :  { %1609 = vst [vmem:[#allocation6 + $0x50] sm:$0xff] %v1577_v31  ;;  %v1580_v33 = vadd.f32 %v1839_v22, %v2382_v25  ;;  %v1571_v34 = vpop.f32.mrb[27].mxu0 }
0x11c3   :  { %1607 = vst [vmem:[#allocation6 + $0x40] sm:$0xff] %v1569_v20  ;;  %v1572_v35 = vadd.f32 %v2382_v25, %v1571_v34 }
0x11c4   :  { %1610 = vst [vmem:[#allocation6 + $0x58] sm:$0xff] %v1580_v33  ;;  %v1987_v42 = vpop.eup %1986 }
0x11c5   :  { %1608 = vst [vmem:[#allocation6 + $0x48] sm:$0xff] %v1572_v35  ;;  %v1989_v45 = vpop.eup %1988 }
0x1227   :  { %v1230_v43 = vpop.permute.xlu0 %1229 }
0x1228   :  { %v1235_v44 = vmul.f32 %v1987_v42, %v1230_v43 }
0x1229   :  { %v1232_v46 = vpop.permute.xlu1 %1231 }
0x122a   :  { %1239 = vrot.lane.b32.xlu0 %v1235_v44, %s2036_s14  ;;  %v1236_v47 = vmul.f32 %v1989_v45, %v1232_v46 }
0x122b   :  { %v1220_v48 = vpop.permute.xlu0 %1219 }
0x122c   :  { %1241 = vrot.lane.b32.xlu1 %v1236_v47, %s2036_s14  ;;  %v1225_v49 = vmul.f32 %v1987_v42, %v1220_v48 }
0x122d   :  { %v1222_v50 = vpop.permute.xlu1 %1221 }
0x122e   :  { %v1226_v53 = vmul.f32 %v1989_v45, %v1222_v50 }
0x129c   :  { %v1240_v51 = vpop.permute.xlu0 %1239 }
0x129d   :  { %v1245_v52 = vadd.f32 %v1240_v51, %v1225_v49 }
0x129e   :  { %v1242_v54 = vpop.permute.xlu1 %1241 }
0x129f   :  { %1990 = vtanh.f32 %v1245_v52  ;;  %v1246_v55 = vadd.f32 %v1242_v54, %v1226_v53 }
0x12a1   :  { %1992 = vtanh.f32 %v1246_v55 }
0x12a9   :  { %v1991_v56 = vpop.eup %1990 }
0x12aa   :  { %1251 = vrot.lane.b32.xlu0 %v1991_v56, %s2038_s17 }
0x12ab   :  { %v1993_v57 = vpop.eup %1992 }
0x12ac   :  { %1253 = vrot.lane.b32.xlu1 %v1993_v57, %s2038_s17 }
0x131c   :  { %v1252_v60 = vpop.permute.xlu0 %1251 }
0x131d   :  { %v1257_v18 = vmul.f32 %v1987_v42, %v1252_v60 }
0x131e   :  { %v1254_v61 = vpop.permute.xlu1 %1253 }
0x131f   :  { %1271 = vrot.lane.b32.xlu0 %v1257_v18, %s2036_s14  ;;  %v1258_v62 = vmul.f32 %v1989_v45, %v1254_v61 }
0x1321   :  { %1273 = vrot.lane.b32.xlu1 %v1258_v62, %s2036_s14 }
0x1323   :  { %1261 = vrot.lane.b32.xlu0 %v1245_v52, %s2039_s22 }
0x1325   :  { %1263 = vrot.lane.b32.xlu1 %v1246_v55, %s2039_s22 }
0x1391   :  { %v1272_v63 = vpop.permute.xlu0 %1271 }
0x1392   :  { %1277 = vst.msk [vmem:[#allocation4] sm:$0xff] %vm29_vm2, %v1272_v63  ;;  %1280 = vst.msk [vmem:[#allocation3 + $0x60] sm:$0xff] %vm29_vm2, %v1272_v63 }
0x1393   :  { %v1274_v4 = vpop.permute.xlu1 %1273 }
0x1394   :  { %1278 = vst.msk [vmem:[#allocation4 + $0x8] sm:$0xff] %vm29_vm2, %v1274_v4  ;;  %1281 = vst.msk [vmem:[#allocation3 + $0x68] sm:$0xff] %vm29_vm2, %v1274_v4 }
0x1395   :  { %v1262_v0 = vpop.permute.xlu0 %1261 }
0x1396   :  { %1267 = vst.msk [vmem:[#allocation5] sm:$0xff] %vm29_vm2, %v1262_v0 }
0x1397   :  { %v1264_v1 = vpop.permute.xlu1 %1263 }
0x1398   :  { %1268 = vst.msk [vmem:[#allocation5 + $0x8] sm:$0xff] %vm29_vm2, %v1264_v1 }
0x1399   :  { %v1285_v28 = vld [vmem:[#allocation4] sm:$0xff] }
0x139a   :  { %v1443_v3 = vld [vmem:[#allocation3 + $0x60] sm:$0xff] }
0x139b   :  { %v1286_v2 = vld [vmem:[#allocation4 + $0x8] sm:$0xff] }
0x139c   :  { %v1444_v5 = vld [vmem:[#allocation3 + $0x68] sm:$0xff]  ;;  %v1287_v7 = vpack.c.bf16 %v1286_v2, %v1285_v28 }
0x139d   :  { %v1453_v27 = vpack.c.bf16 %v1444_v5, %v1443_v3  ;;  %v1364_v8 = vld [vmem:[#allocation5] sm:$0xff] }
0x139e   :  { %1821 = vmatmul.mubr.msk.bf16.vlgmr.msra.gmra.mrb[28].mxu1 %vm29_vm2, %v1287_v7 }
0x139f   :  { %1840 = vmatprep.mubr.msk.bf16.mxu0 %vm29_vm2, %v1453_v27  ;;  %v1365_v23 = vld [vmem:[#allocation5 + $0x8] sm:$0xff] }
0x1471   :  { %v1341_v19 = vpop.f32.mrb[28].mxu1 }
0x1472   :  { %v1348_v10 = vadd.f32 %v1341_v19, %v218_v17  ;;  %v1822_v11 = vpop.f32.mrb[29].mxu1 }
0x1473   :  { %v1344_v12 = vpop.f32.mrb[30].mxu1 }
0x1474   :  { %1994 = vtanh.f32 %v1348_v10  ;;  %v1349_v13 = vadd.f32 %v1344_v12, %v221_v9  ;;  %v1823_v14 = vpop.f32.mrb[31].mxu1  ;;  %v1686_v26 = vmul.f32 -1.442695, %v1348_v10 }
0x1476   :  { %1996 = vtanh.f32 %v1349_v13  ;;  %v1687_v16 = vmul.f32 -1.442695, %v1349_v13 }
0x1477   :  { %1998 = vpow2.f32 %v1686_v26 }
0x1478   :  { %2000 = vpow2.f32 %v1687_v16 }
0x147e   :  { %v1995_v15 = vpop.eup %1994 }
0x147f   :  { %1378 = vrot.lane.b32.xlu0 %v1995_v15, %s2038_s17 }
0x1480   :  { %v1997_v6 = vpop.eup %1996 }
0x1481   :  { %1380 = vrot.lane.b32.xlu1 %v1997_v6, %s2038_s17  ;;  %v1999_v21 = vpop.eup %1998 }
0x1482   :  { %v2001_v24 = vpop.eup %2000  ;;  %v1356_v29 = vadd.f32 1.0, %v1999_v21 }
0x1483   :  { %1368 = vrot.lane.b32.xlu0 %v1364_v8, %s2036_s14  ;;  %v1357_v30 = vadd.f32 1.0, %v2001_v24 }
0x1484   :  { %2002 = vrcp.f32 %v1356_v29 }
0x1485   :  { %1370 = vrot.lane.b32.xlu1 %v1365_v23, %s2036_s14  ;;  %2004 = vrcp.f32 %v1357_v30 }
0x148e   :  { %v2003_v31 = vpop.eup %2002 }
0x148f   :  { %v2005_v22 = vpop.eup %2004 }
0x14f1   :  { %v1379_v32 = vpop.permute.xlu0 %1378 }
0x14f2   :  { %v1384_v20 = vmul.f32 %v2003_v31, %v1379_v32 }
0x14f3   :  { %v1381_v33 = vpop.permute.xlu1 %1380 }
0x14f4   :  { %1388 = vrot.lane.b32.xlu0 %v1384_v20, %s2036_s14  ;;  %v1385_v34 = vmul.f32 %v2005_v22, %v1381_v33 }
0x14f5   :  { %v1369_v35 = vpop.permute.xlu0 %1368 }
0x14f6   :  { %1390 = vrot.lane.b32.xlu1 %v1385_v34, %s2036_s14  ;;  %v1374_v36 = vmul.f32 %v2003_v31, %v1369_v35 }
0x14f7   :  { %v1371_v37 = vpop.permute.xlu1 %1370 }
0x14f8   :  { %v1375_v40 = vmul.f32 %v2005_v22, %v1371_v37 }
0x1566   :  { %v1389_v38 = vpop.permute.xlu0 %1388 }
0x1567   :  { %v1394_v39 = vadd.f32 %v1389_v38, %v1374_v36 }
0x1568   :  { %v1391_v41 = vpop.permute.xlu1 %1390 }
0x1569   :  { %2006 = vtanh.f32 %v1394_v39  ;;  %v1395_v42 = vadd.f32 %v1391_v41, %v1375_v40 }
0x156b   :  { %2008 = vtanh.f32 %v1395_v42 }
0x1573   :  { %v2007_v43 = vpop.eup %2006 }
0x1574   :  { %1400 = vrot.lane.b32.xlu0 %v2007_v43, %s2038_s17 }
0x1575   :  { %v2009_v44 = vpop.eup %2008 }
0x1576   :  { %1402 = vrot.lane.b32.xlu1 %v2009_v44, %s2038_s17 }
0x15e6   :  { %v1401_v45 = vpop.permute.xlu0 %1400 }
0x15e7   :  { %v1406_v46 = vmul.f32 %v2003_v31, %v1401_v45 }
0x15e8   :  { %v1403_v47 = vpop.permute.xlu1 %1402 }
0x15e9   :  { %1420 = vrot.lane.b32.xlu0 %v1406_v46, %s2036_s14  ;;  %v1407_v48 = vmul.f32 %v2005_v22, %v1403_v47 }
0x15eb   :  { %1422 = vrot.lane.b32.xlu1 %v1407_v48, %s2036_s14  ;;  %s1620_s14 = sshll.u32 %s2040_s2, 4  ;;  %s1621_s14 = int_to_ptr.vmem [resolvable:$true] %s1620_s14 }
0x15ec   :  { %s2011_s17 = scalar_lea.vmem %s1621_s14, 2048  ;;  %p2016_p1 = scmp.lt.s32.totalorder %s1621_s14, %s1621_s14 }
0x15ed   :  { %1410 = vrot.lane.b32.xlu0 %v1394_v39, %s2039_s22  ;;  %p2012_p0 = scmp.ne.s32.totalorder %s1621_s14, %s2011_s17  ;;  %p2017_p2 = scmp.lt.s32.totalorder %s2011_s17, %s2011_s17 }
0x15ef   :  { %1412 = vrot.lane.b32.xlu1 %v1395_v42, %s2039_s22  ;;  %p2018_p3 = por %p2017_p2, %p2016_p1 }
0x15f1   :  { %p2019_p4 = pnand %p2018_p3, %p2012_p0 }
0x165b   :  { %v1421_v49 = vpop.permute.xlu0 %1420 }
0x165c   :  { %1426 = vst.msk [vmem:[#allocation4] sm:$0xff] %vm29_vm2, %v1421_v49  ;;  %1429 = vst.msk [vmem:[#allocation3 + $0x70] sm:$0xff] %vm29_vm2, %v1421_v49 }
0x165d   :  { %v1423_v50 = vpop.permute.xlu1 %1422 }
0x165e   :  { %1427 = vst.msk [vmem:[#allocation4 + $0x8] sm:$0xff] %vm29_vm2, %v1423_v50  ;;  %1430 = vst.msk [vmem:[#allocation3 + $0x78] sm:$0xff] %vm29_vm2, %v1423_v50 }
0x165f   :  { %v1411_v51 = vpop.permute.xlu0 %1410 }
0x1660   :  { %1416 = vst.msk [vmem:[#allocation5] sm:$0xff] %vm29_vm2, %v1411_v51 }
0x1661   :  { %v1413_v52 = vpop.permute.xlu1 %1412 }
0x1662   :  { %1417 = vst.msk [vmem:[#allocation5 + $0x8] sm:$0xff] %vm29_vm2, %v1413_v52 }
0x1663   :  { %v1445_v53 = vld [vmem:[#allocation3 + $0x70] sm:$0xff] }
0x1665   :  { %v1446_v54 = vld [vmem:[#allocation3 + $0x78] sm:$0xff] }
0x1666   :  { %v1454_v55 = vpack.c.bf16 %v1446_v54, %v1445_v53 }
0x1668   :  { %1841 = vmatmul.mubr.msk.bf16.gmra.mrb[28].mxu0 %vm29_vm2, %v1454_v55 }
0x173b   :  { %v1842_v56 = vpop.f32.mrb[28].mxu0 }
0x173c   :  { %v1593_v57 = vadd.f32 %v1842_v56, %v2382_v25  ;;  %v1584_v58 = vpop.f32.mrb[29].mxu0 }
0x173d   :  { %v1585_v59 = vadd.f32 %v2382_v25, %v1584_v58  ;;  %v1843_v60 = vpop.f32.mrb[30].mxu0 }
0x173e   :  { %1613 = vst [vmem:[#allocation6 + $0x70] sm:$0xff] %v1593_v57  ;;  %v1596_v18 = vadd.f32 %v1843_v60, %v2382_v25  ;;  %v1587_v61 = vpop.f32.mrb[31].mxu0 }
0x173f   :  { %1611 = vst [vmem:[#allocation6 + $0x60] sm:$0xff] %v1585_v59  ;;  %v1588_v62 = vadd.f32 %v2382_v25, %v1587_v61 }
0x1740   :  { %1614 = vst [vmem:[#allocation6 + $0x78] sm:$0xff] %v1596_v18 }
0x1741   :  { %1612 = vst [vmem:[#allocation6 + $0x68] sm:$0xff] %v1588_v62 }
0x1742   :  { %2022 = shalt.err (!%p2019_p4)
}
0x1743   :  { %s2023_s8 = scalar_lea.hbm %s2468_s6, 2048 }
0x1744   :  { %p2024_p5 = scmp.ne.s32.totalorder %s2468_s6, %s2023_s8  ;;  %p2027_p6 = scmp.lt.u32.totalorder %s2023_s8, %s2468_s6 }
0x1746   :  { %p2029_p7 = pnand %p2027_p6, %p2024_p5 }
0x1748   :  { %2032 = shalt.err (!%p2029_p7)
}
0x1749   :  { %s2041_s13 = smov 128   ;;  %s2042_s15 = smov 8  }
0x174a   :  { %1626 = dma.vmem_to_hbm [thread:$0]  %s1621_s14, 2048, %s2468_s6, [#allocation7], %s2041_s13, %s2041_s13, %s2042_s15  }
0x174b   :  { %2033 = dma.done.wait [#allocation7], 2048  }
0x174c   :  { %2034 = vsyncadd [#allocation7], 4294965248 }
0x174d   :  { %1630 = vsyncpa [#allocation7], 1 }

</bundles_post_ra>
